<compile_context>
chip_gen: v5e
topology: v5e:2x2
jax: 0.10.0
libtpu: 0.0.40
codegen_flags: <defaults>
</compile_context>

<pallas_src>
import functools

import jax
import jax.numpy as jnp
from jax import lax
from jax.experimental import pallas as pl
from jax.experimental.pallas import tpu as pltpu

# ---- model hyper-parameters (GATClassifier(in_dim, hidden_dim, out_dim, heads)) ----
IN_DIM = 256          # ALBERT hidden_size (AlbertConfig(hidden_size=256))
EMB_DIM = 128         # ALBERT embedding_size (projected to hidden_size)
HIDDEN_DIM = 8        # GAT hidden per head
OUT_DIM = 16          # GAT output dim (LSTM input)
NUM_HEADS = 4
NUM_CLASSES = 2
LSTM_HIDDEN = 32
P_DROP = 0.6
NEG_SLOPE = 0.2       # GATConv leaky_relu negative_slope default
THRESHOLD = 0.2

_VMEM = pl.BlockSpec(memory_space=pltpu.MemorySpace.VMEM)


# ----------------------------- in-kernel helpers -----------------------------
def _elu(x):
    # exp only on the non-positive branch to avoid inf in the discarded branch
    return jnp.where(x > 0, x, jnp.exp(jnp.minimum(x, 0.0)) - 1.0)


def _dot_t(a, b):
    # out[i, j] = sum_k a[i, k] * b[j, k]   (contract last dims; no transpose op)
    return lax.dot_general(a, b, (((1,), (1,)), ((), ())),
                           preferred_element_type=jnp.float32)


def _gat_layer(x, adj, w, a_src, a_dst, bias, att_drop, *, heads, f_out, concat):
    """Dense GATConv: W x (all heads in ONE matmul) -> masked attention softmax ->
    attention dropout (pre-scaled mask) -> aggregate -> bias."""
    hf_all = jnp.dot(x, w, preferred_element_type=jnp.float32)        # (N, heads*f_out)
    head_outs = []
    acc = None
    for h in range(heads):
        hf = hf_all[:, h * f_out:(h + 1) * f_out]                     # (N, f_out)
        a_d = a_dst[h:h + 1, :]                                       # (1, f_out)
        a_s = a_src[h:h + 1, :]
        e_dst = jnp.sum(hf * a_d, axis=-1, keepdims=True)             # (N, 1)
        e_src = _dot_t(a_s, hf)                                       # (1, N) row, no outer/transpose
        e = e_dst + e_src                                             # e[i,j] = dst_i + src_j
        e = jnp.where(e > 0, e, NEG_SLOPE * e)                        # LeakyReLU
        e = jnp.where(adj > 0, e, jnp.float32(-1e9))                  # mask non-edges
        e = e - jnp.max(e, axis=-1, keepdims=True)
        p = jnp.exp(e)
        alpha = p / jnp.sum(p, axis=-1, keepdims=True)                # softmax over neighbors
        alpha = alpha * att_drop[h]                                   # attention dropout
        oh = jnp.dot(alpha, hf, preferred_element_type=jnp.float32)   # (N, f_out)
        if concat:
            head_outs.append(oh)
        else:
            acc = oh if acc is None else acc + oh
    if concat:
        return jnp.concatenate(head_outs, axis=-1) + bias             # one lane-dense result
    return acc * (1.0 / heads) + bias


# ------------------------------- fused kernel --------------------------------
def _summarizer_kernel(emb_ref, pw_ref, pb_ref,
                       w1_ref, a1s_ref, a1d_ref, b1_ref,
                       w2_ref, a2s_ref, a2d_ref, b2_ref,
                       wih_ref, whh_ref, bl_ref, wfc_ref, bfc_ref,
                       d1x_ref, d1a_ref, d2x_ref, d2a_ref,
                       o_ref, gx_scr, h_scr, *, threshold):
    s, l, _ = emb_ref.shape

    # (1) ALBERT embedding block: mean-pool tokens in embedding space, then project once
    #     (mean commutes with the affine projection).
    mean_emb = jnp.sum(emb_ref[...], axis=1) * (1.0 / l)              # (S, 128)
    features = (jnp.dot(mean_emb, pw_ref[...],
                        preferred_element_type=jnp.float32)
                + pb_ref[...])                                        # (S, 256)

    # (2) build_graph: cosine adjacency via rsqrt-normalized gram matrix (+eps, no divide)
    sumsq = jnp.sum(features * features, axis=-1, keepdims=True)      # (S, 1)
    xn = features * lax.rsqrt(sumsq + 1e-12)
    cos = _dot_t(xn, xn)                                              # (S, S)
    adj = (cos > threshold).astype(jnp.float32)

    # (3) GATClassifier
    x1 = features * d1x_ref[...]                                      # F.dropout(p=0.6, training=True)
    h1 = _gat_layer(x1, adj, w1_ref[...], a1s_ref[...], a1d_ref[...],
                    b1_ref[...], d1a_ref[...],
                    heads=NUM_HEADS, f_out=HIDDEN_DIM, concat=True)   # (S, 32)
    h1 = _elu(h1)
    x2 = h1 * d2x_ref[...]                                            # F.dropout
    h2 = _gat_layer(x2, adj, w2_ref[...], a2s_ref[...], a2d_ref[...],
                    b2_ref[...], d2a_ref[...],
                    heads=1, f_out=OUT_DIM, concat=False)             # (S, 16)

    # (4) nn.LSTM(out_dim, 32, batch_first=True) over the node sequence (batch=1)
    #     input gates precomputed for all steps in one matmul
    gx_scr[...] = (jnp.dot(h2, wih_ref[...],
                           preferred_element_type=jnp.float32) + bl_ref[...])   # (S, 128)

    def step(t, carry):
        h, c = carry
        gates = gx_scr[pl.ds(t, 1), :] + jnp.dot(
            h, whh_ref[...], preferred_element_type=jnp.float32)      # (1, 128)
        i_g = jax.nn.sigmoid(gates[:, 0:LSTM_HIDDEN])
        f_g = jax.nn.sigmoid(gates[:, LSTM_HIDDEN:2 * LSTM_HIDDEN])
        g_g = jnp.tanh(gates[:, 2 * LSTM_HIDDEN:3 * LSTM_HIDDEN])
        o_g = jax.nn.sigmoid(gates[:, 3 * LSTM_HIDDEN:4 * LSTM_HIDDEN])
        c = f_g * c + i_g * g_g
        h = o_g * jnp.tanh(c)
        h_scr[pl.ds(t, 1), :] = h
        return (h, c)

    h0 = jnp.zeros((1, LSTM_HIDDEN), jnp.float32)
    c0 = jnp.zeros((1, LSTM_HIDDEN), jnp.float32)
    lax.fori_loop(0, s, step, (h0, c0), unroll=True)

    # nn.Linear(32, num_classes) applied once to all hidden states, single store
    o_ref[...] = (jnp.dot(h_scr[...], wfc_ref[...],
                          preferred_element_type=jnp.float32) + bfc_ref[...])


# ----------------------------- wrapper (glue) ---------------------------------
def summarizer_forward(params, sent_tokens, offsets, dropout_key, threshold=THRESHOLD):
    """Single-document forward.  Returns (1, N_sentences, num_classes)."""
    del offsets  # single doc: all sentences form one graph
    s, l = sent_tokens.shape
    # TODO(synk): tokenizer + pretrained ALBERT encoder stack skipped (see header comment).
    emb = params["embed_table"][sent_tokens].astype(jnp.float32)      # (S, L, 128) gather (glue)

    # Pre-scaled dropout masks (training=True, p=0.6), deterministic, host-side
    # (pltpu.prng_* is Mosaic-only, unavailable in interpret mode).
    k1, k2, k3, k4 = jax.random.split(dropout_key, 4)
    scale = 1.0 / (1.0 - P_DROP)
    keep = 1.0 - P_DROP
    d1x = jax.random.bernoulli(k1, keep, (s, IN_DIM)).astype(jnp.float32) * scale
    d1a = jax.random.bernoulli(k2, keep, (NUM_HEADS, s, s)).astype(jnp.float32) * scale
    d2x = jax.random.bernoulli(k3, keep, (s, NUM_HEADS * HIDDEN_DIM)).astype(jnp.float32) * scale
    d2a = jax.random.bernoulli(k4, keep, (1, s, s)).astype(jnp.float32) * scale

    kern = functools.partial(_summarizer_kernel, threshold=threshold)
    logits = pl.pallas_call(
        kern,
        out_shape=jax.ShapeDtypeStruct((s, NUM_CLASSES), jnp.float32),
        in_specs=[_VMEM] * 20,
        out_specs=_VMEM,
        scratch_shapes=[pltpu.VMEM((s, 4 * LSTM_HIDDEN), jnp.float32),   # precomputed LSTM input gates
                        pltpu.VMEM((s, LSTM_HIDDEN), jnp.float32)],      # LSTM hidden states
    )(emb,
      params["proj_w"], params["proj_b"],
      params["gat1"]["w"], params["gat1"]["a_src"], params["gat1"]["a_dst"], params["gat1"]["b"],
      params["gat2"]["w"], params["gat2"]["a_src"], params["gat2"]["a_dst"], params["gat2"]["b"],
      params["lstm"]["w_ih"], params["lstm"]["w_hh"], params["lstm"]["b"],
      params["fc"]["w"], params["fc"]["b"],
      d1x, d1a, d2x, d2a)
    return logits.reshape(1, s, NUM_CLASSES)                          # x.view(-1, N, out_dim) batching


# ----------------------------- parameter init ---------------------------------
def init_params(key, vocab=1000):
    ks = jax.random.split(key, 12)

    def glorot(k, shape):
        lim = (6.0 / (shape[0] + shape[-1])) ** 0.5
        return jax.random.uniform(k, shape, jnp.float32, -lim, lim)

    return {
        "embed_table": glorot(ks[0], (vocab, EMB_DIM)),
        "proj_w": glorot(ks[1], (EMB_DIM, IN_DIM)),
        "proj_b": jnp.zeros((1, IN_DIM), jnp.float32),
        "gat1": {
            "w": glorot(ks[2], (IN_DIM, NUM_HEADS * HIDDEN_DIM)),
            "a_src": glorot(ks[3], (NUM_HEADS, HIDDEN_DIM)),
            "a_dst": glorot(ks[4], (NUM_HEADS, HIDDEN_DIM)),
            "b": jnp.zeros((1, NUM_HEADS * HIDDEN_DIM), jnp.float32),
        },
        "gat2": {
            "w": glorot(ks[5], (NUM_HEADS * HIDDEN_DIM, OUT_DIM)),
            "a_src": glorot(ks[6], (1, OUT_DIM)),
            "a_dst": glorot(ks[7], (1, OUT_DIM)),
            "b": jnp.zeros((1, OUT_DIM), jnp.float32),
        },
        "lstm": {
            "w_ih": glorot(ks[8], (OUT_DIM, 4 * LSTM_HIDDEN)),
            "w_hh": glorot(ks[9], (LSTM_HIDDEN, 4 * LSTM_HIDDEN)),
            "b": jnp.zeros((1, 4 * LSTM_HIDDEN), jnp.float32),
        },
        "fc": {
            "w": glorot(ks[10], (LSTM_HIDDEN, NUM_CLASSES)),
            "b": jnp.zeros((1, NUM_CLASSES), jnp.float32),
        },
    }


# ------------------------------------ main -------------------------------------
if __name__ == "__main__":
    NUM_SENT = 8      # sentences in the (single) document = graph nodes
    MAX_LEN = 64      # tokenizer max_length in the reference
    key = jax.random.PRNGKey(0)
    kp, kt, kd = jax.random.split(key, 3)
    params = init_params(kp)

    sent_tokens = jax.random.randint(kt, (NUM_SENT, MAX_LEN), 0, 1000, dtype=jnp.int32)
    offsets = jnp.array([0, NUM_SENT], jnp.int32)

    out = summarizer_forward(params, sent_tokens, offsets, dropout_key=kd)
    out = jax.block_until_ready(out)
    assert out.shape == (1, NUM_SENT, NUM_CLASSES), out.shape
    assert bool(jnp.all(jnp.isfinite(out)))
    print("KERNEL_OK")
</pallas_src>

<mosaic_0001>
module attributes {stable_mosaic.version = 11 : i64} {
  func.func @_summarizer_kernel(%arg0: memref<8x64x128xf32, #tpu.memory_space<vmem>>, %arg1: memref<128x256xf32, #tpu.memory_space<vmem>>, %arg2: memref<1x256xf32, #tpu.memory_space<vmem>>, %arg3: memref<256x32xf32, #tpu.memory_space<vmem>>, %arg4: memref<4x8xf32, #tpu.memory_space<vmem>>, %arg5: memref<4x8xf32, #tpu.memory_space<vmem>>, %arg6: memref<1x32xf32, #tpu.memory_space<vmem>>, %arg7: memref<32x16xf32, #tpu.memory_space<vmem>>, %arg8: memref<1x16xf32, #tpu.memory_space<vmem>>, %arg9: memref<1x16xf32, #tpu.memory_space<vmem>>, %arg10: memref<1x16xf32, #tpu.memory_space<vmem>>, %arg11: memref<16x128xf32, #tpu.memory_space<vmem>>, %arg12: memref<32x128xf32, #tpu.memory_space<vmem>>, %arg13: memref<1x128xf32, #tpu.memory_space<vmem>>, %arg14: memref<32x2xf32, #tpu.memory_space<vmem>>, %arg15: memref<1x2xf32, #tpu.memory_space<vmem>>, %arg16: memref<8x256xf32, #tpu.memory_space<vmem>>, %arg17: memref<4x8x8xf32, #tpu.memory_space<vmem>>, %arg18: memref<8x32xf32, #tpu.memory_space<vmem>>, %arg19: memref<1x8x8xf32, #tpu.memory_space<vmem>>, %arg20: memref<8x2xf32, #tpu.memory_space<vmem>>, %arg21: memref<8x128xf32, #tpu.memory_space<vmem>>, %arg22: memref<8x32xf32, #tpu.memory_space<vmem>>) attributes {dimension_semantics = [], scalar_prefetch = 0 : i64, scratch_operands = 2 : i64, tpu.core_type = #tpu.core_type<tc>} {
    %c0 = arith.constant 0 : index
    %c0_0 = arith.constant 0 : index
    %c0_1 = arith.constant 0 : index
    %0 = vector.load %arg0[%c0, %c0_0, %c0_1] : memref<8x64x128xf32, #tpu.memory_space<vmem>>, vector<8x64x128xf32>
    %cst = arith.constant dense<0.000000e+00> : vector<8x128xf32>
    %1 = vector.multi_reduction <add>, %0, %cst [1] : vector<8x64x128xf32> to vector<8x128xf32>
    %cst_2 = arith.constant 1.562500e-02 : f32
    %2 = vector.broadcast %cst_2 : f32 to vector<8x128xf32>
    %3 = arith.mulf %1, %2 : vector<8x128xf32>
    %c0_3 = arith.constant 0 : index
    %c0_4 = arith.constant 0 : index
    %4 = vector.load %arg1[%c0_3, %c0_4] : memref<128x256xf32, #tpu.memory_space<vmem>>, vector<128x256xf32>
    %cst_5 = arith.constant dense<0.000000e+00> : vector<8x256xf32>
    %5 = tpu.matmul %3, %4, %cst_5 {dimension_numbers = #tpu.dot_dimension_numbers<[1], [0], [0], [1], [0, 0, 1, 1], [], []>} : vector<8x128xf32>, vector<128x256xf32>, vector<8x256xf32> -> vector<8x256xf32>
    %c0_6 = arith.constant 0 : index
    %c0_7 = arith.constant 0 : index
    %6 = vector.load %arg2[%c0_6, %c0_7] : memref<1x256xf32, #tpu.memory_space<vmem>>, vector<1x256xf32>
    %7 = vector.broadcast %6 : vector<1x256xf32> to vector<8x256xf32>
    %8 = arith.addf %5, %7 : vector<8x256xf32>
    %9 = arith.mulf %8, %8 : vector<8x256xf32>
    %cst_8 = arith.constant dense<0.000000e+00> : vector<8xf32>
    %10 = vector.multi_reduction <add>, %9, %cst_8 [1] : vector<8x256xf32> to vector<8xf32>
    %11 = vector.shape_cast %10 : vector<8xf32> to vector<8x1xf32>
    %cst_9 = arith.constant 9.99999996E-13 : f32
    %12 = vector.broadcast %cst_9 : f32 to vector<8x1xf32>
    %13 = arith.addf %11, %12 : vector<8x1xf32>
    %14 = math.rsqrt %13 : vector<8x1xf32>
    %15 = vector.broadcast %14 : vector<8x1xf32> to vector<8x256xf32>
    %16 = arith.mulf %8, %15 : vector<8x256xf32>
    %cst_10 = arith.constant dense<0.000000e+00> : vector<8x8xf32>
    %17 = tpu.matmul %16, %16, %cst_10 {dimension_numbers = #tpu.dot_dimension_numbers<[1], [1], [0], [0], [0, 0, 1, 0], [], []>} : vector<8x256xf32>, vector<8x256xf32>, vector<8x8xf32> -> vector<8x8xf32>
    %cst_11 = arith.constant 2.000000e-01 : f32
    %18 = vector.broadcast %cst_11 : f32 to vector<8x8xf32>
    %19 = arith.cmpf ogt, %17, %18 : vector<8x8xf32>
    %20 = arith.extui %19 : vector<8x8xi1> to vector<8x8xi32>
    %21 = arith.sitofp %20 : vector<8x8xi32> to vector<8x8xf32>
    %c0_12 = arith.constant 0 : index
    %c0_13 = arith.constant 0 : index
    %22 = vector.load %arg16[%c0_12, %c0_13] : memref<8x256xf32, #tpu.memory_space<vmem>>, vector<8x256xf32>
    %23 = arith.mulf %8, %22 : vector<8x256xf32>
    %c0_14 = arith.constant 0 : index
    %c0_15 = arith.constant 0 : index
    %24 = vector.load %arg3[%c0_14, %c0_15] : memref<256x32xf32, #tpu.memory_space<vmem>>, vector<256x32xf32>
    %c0_16 = arith.constant 0 : index
    %c0_17 = arith.constant 0 : index
    %25 = vector.load %arg4[%c0_16, %c0_17] : memref<4x8xf32, #tpu.memory_space<vmem>>, vector<4x8xf32>
    %c0_18 = arith.constant 0 : index
    %c0_19 = arith.constant 0 : index
    %26 = vector.load %arg5[%c0_18, %c0_19] : memref<4x8xf32, #tpu.memory_space<vmem>>, vector<4x8xf32>
    %c0_20 = arith.constant 0 : index
    %c0_21 = arith.constant 0 : index
    %27 = vector.load %arg6[%c0_20, %c0_21] : memref<1x32xf32, #tpu.memory_space<vmem>>, vector<1x32xf32>
    %c0_22 = arith.constant 0 : index
    %c0_23 = arith.constant 0 : index
    %c0_24 = arith.constant 0 : index
    %28 = vector.load %arg17[%c0_22, %c0_23, %c0_24] : memref<4x8x8xf32, #tpu.memory_space<vmem>>, vector<4x8x8xf32>
    %cst_25 = arith.constant dense<0.000000e+00> : vector<8x32xf32>
    %29 = tpu.matmul %23, %24, %cst_25 {dimension_numbers = #tpu.dot_dimension_numbers<[1], [0], [0], [1], [0, 0, 1, 1], [], []>} : vector<8x256xf32>, vector<256x32xf32>, vector<8x32xf32> -> vector<8x32xf32>
    %30 = vector.extract_strided_slice %29 {offsets = [0, 0], sizes = [8, 8], strides = [1, 1]} : vector<8x32xf32> to vector<8x8xf32>
    %31 = vector.extract_strided_slice %26 {offsets = [0, 0], sizes = [1, 8], strides = [1, 1]} : vector<4x8xf32> to vector<1x8xf32>
    %32 = vector.extract_strided_slice %25 {offsets = [0, 0], sizes = [1, 8], strides = [1, 1]} : vector<4x8xf32> to vector<1x8xf32>
    %33 = vector.broadcast %31 : vector<1x8xf32> to vector<8x8xf32>
    %34 = arith.mulf %30, %33 : vector<8x8xf32>
    %cst_26 = arith.constant dense<0.000000e+00> : vector<8xf32>
    %35 = vector.multi_reduction <add>, %34, %cst_26 [1] : vector<8x8xf32> to vector<8xf32>
    %36 = vector.shape_cast %35 : vector<8xf32> to vector<8x1xf32>
    %cst_27 = arith.constant dense<0.000000e+00> : vector<1x8xf32>
    %37 = tpu.matmul %32, %30, %cst_27 {dimension_numbers = #tpu.dot_dimension_numbers<[1], [1], [0], [0], [0, 0, 1, 0], [], []>} : vector<1x8xf32>, vector<8x8xf32>, vector<1x8xf32> -> vector<1x8xf32>
    %38 = vector.broadcast %36 : vector<8x1xf32> to vector<8x8xf32>
    %39 = vector.broadcast %37 : vector<1x8xf32> to vector<8x8xf32>
    %40 = arith.addf %38, %39 : vector<8x8xf32>
    %cst_28 = arith.constant 0.000000e+00 : f32
    %41 = vector.broadcast %cst_28 : f32 to vector<8x8xf32>
    %42 = arith.cmpf ogt, %40, %41 : vector<8x8xf32>
    %cst_29 = arith.constant 2.000000e-01 : f32
    %43 = vector.broadcast %cst_29 : f32 to vector<8x8xf32>
    %44 = arith.mulf %43, %40 : vector<8x8xf32>
    %45 = arith.select %42, %40, %44 : vector<8x8xi1>, vector<8x8xf32>
    %cst_30 = arith.constant 0.000000e+00 : f32
    %46 = vector.broadcast %cst_30 : f32 to vector<8x8xf32>
    %47 = arith.cmpf ogt, %21, %46 : vector<8x8xf32>
    %cst_31 = arith.constant -1.000000e+09 : f32
    %48 = vector.broadcast %cst_31 : f32 to vector<8x8xf32>
    %49 = arith.select %47, %45, %48 : vector<8x8xi1>, vector<8x8xf32>
    %cst_32 = arith.constant dense<0xFF800000> : vector<8xf32>
    %50 = vector.multi_reduction <maximumf>, %49, %cst_32 [1] : vector<8x8xf32> to vector<8xf32>
    %51 = vector.shape_cast %50 : vector<8xf32> to vector<8x1xf32>
    %52 = vector.broadcast %51 : vector<8x1xf32> to vector<8x8xf32>
    %53 = arith.subf %49, %52 : vector<8x8xf32>
    %54 = math.exp %53 : vector<8x8xf32>
    %cst_33 = arith.constant dense<0.000000e+00> : vector<8xf32>
    %55 = vector.multi_reduction <add>, %54, %cst_33 [1] : vector<8x8xf32> to vector<8xf32>
    %56 = vector.shape_cast %55 : vector<8xf32> to vector<8x1xf32>
    %57 = vector.broadcast %56 : vector<8x1xf32> to vector<8x8xf32>
    %58 = arith.divf %54, %57 : vector<8x8xf32>
    %59 = vector.extract_strided_slice %28 {offsets = [0, 0, 0], sizes = [1, 8, 8], strides = [1, 1, 1]} : vector<4x8x8xf32> to vector<1x8x8xf32>
    %60 = vector.shape_cast %59 : vector<1x8x8xf32> to vector<8x8xf32>
    %61 = arith.mulf %58, %60 : vector<8x8xf32>
    %cst_34 = arith.constant dense<0.000000e+00> : vector<8x8xf32>
    %62 = tpu.matmul %61, %30, %cst_34 {dimension_numbers = #tpu.dot_dimension_numbers<[1], [0], [0], [1], [0, 0, 1, 1], [], []>} : vector<8x8xf32>, vector<8x8xf32>, vector<8x8xf32> -> vector<8x8xf32>
    %63 = vector.extract_strided_slice %29 {offsets = [0, 8], sizes = [8, 8], strides = [1, 1]} : vector<8x32xf32> to vector<8x8xf32>
    %64 = vector.extract_strided_slice %26 {offsets = [1, 0], sizes = [1, 8], strides = [1, 1]} : vector<4x8xf32> to vector<1x8xf32>
    %65 = vector.extract_strided_slice %25 {offsets = [1, 0], sizes = [1, 8], strides = [1, 1]} : vector<4x8xf32> to vector<1x8xf32>
    %66 = vector.broadcast %64 : vector<1x8xf32> to vector<8x8xf32>
    %67 = arith.mulf %63, %66 : vector<8x8xf32>
    %cst_35 = arith.constant dense<0.000000e+00> : vector<8xf32>
    %68 = vector.multi_reduction <add>, %67, %cst_35 [1] : vector<8x8xf32> to vector<8xf32>
    %69 = vector.shape_cast %68 : vector<8xf32> to vector<8x1xf32>
    %cst_36 = arith.constant dense<0.000000e+00> : vector<1x8xf32>
    %70 = tpu.matmul %65, %63, %cst_36 {dimension_numbers = #tpu.dot_dimension_numbers<[1], [1], [0], [0], [0, 0, 1, 0], [], []>} : vector<1x8xf32>, vector<8x8xf32>, vector<1x8xf32> -> vector<1x8xf32>
    %71 = vector.broadcast %69 : vector<8x1xf32> to vector<8x8xf32>
    %72 = vector.broadcast %70 : vector<1x8xf32> to vector<8x8xf32>
    %73 = arith.addf %71, %72 : vector<8x8xf32>
    %cst_37 = arith.constant 0.000000e+00 : f32
    %74 = vector.broadcast %cst_37 : f32 to vector<8x8xf32>
    %75 = arith.cmpf ogt, %73, %74 : vector<8x8xf32>
    %cst_38 = arith.constant 2.000000e-01 : f32
    %76 = vector.broadcast %cst_38 : f32 to vector<8x8xf32>
    %77 = arith.mulf %76, %73 : vector<8x8xf32>
    %78 = arith.select %75, %73, %77 : vector<8x8xi1>, vector<8x8xf32>
    %cst_39 = arith.constant 0.000000e+00 : f32
    %79 = vector.broadcast %cst_39 : f32 to vector<8x8xf32>
    %80 = arith.cmpf ogt, %21, %79 : vector<8x8xf32>
    %cst_40 = arith.constant -1.000000e+09 : f32
    %81 = vector.broadcast %cst_40 : f32 to vector<8x8xf32>
    %82 = arith.select %80, %78, %81 : vector<8x8xi1>, vector<8x8xf32>
    %cst_41 = arith.constant dense<0xFF800000> : vector<8xf32>
    %83 = vector.multi_reduction <maximumf>, %82, %cst_41 [1] : vector<8x8xf32> to vector<8xf32>
    %84 = vector.shape_cast %83 : vector<8xf32> to vector<8x1xf32>
    %85 = vector.broadcast %84 : vector<8x1xf32> to vector<8x8xf32>
    %86 = arith.subf %82, %85 : vector<8x8xf32>
    %87 = math.exp %86 : vector<8x8xf32>
    %cst_42 = arith.constant dense<0.000000e+00> : vector<8xf32>
    %88 = vector.multi_reduction <add>, %87, %cst_42 [1] : vector<8x8xf32> to vector<8xf32>
    %89 = vector.shape_cast %88 : vector<8xf32> to vector<8x1xf32>
    %90 = vector.broadcast %89 : vector<8x1xf32> to vector<8x8xf32>
    %91 = arith.divf %87, %90 : vector<8x8xf32>
    %92 = vector.extract_strided_slice %28 {offsets = [1, 0, 0], sizes = [1, 8, 8], strides = [1, 1, 1]} : vector<4x8x8xf32> to vector<1x8x8xf32>
    %93 = vector.shape_cast %92 : vector<1x8x8xf32> to vector<8x8xf32>
    %94 = arith.mulf %91, %93 : vector<8x8xf32>
    %cst_43 = arith.constant dense<0.000000e+00> : vector<8x8xf32>
    %95 = tpu.matmul %94, %63, %cst_43 {dimension_numbers = #tpu.dot_dimension_numbers<[1], [0], [0], [1], [0, 0, 1, 1], [], []>} : vector<8x8xf32>, vector<8x8xf32>, vector<8x8xf32> -> vector<8x8xf32>
    %96 = vector.extract_strided_slice %29 {offsets = [0, 16], sizes = [8, 8], strides = [1, 1]} : vector<8x32xf32> to vector<8x8xf32>
    %97 = vector.extract_strided_slice %26 {offsets = [2, 0], sizes = [1, 8], strides = [1, 1]} : vector<4x8xf32> to vector<1x8xf32>
    %98 = vector.extract_strided_slice %25 {offsets = [2, 0], sizes = [1, 8], strides = [1, 1]} : vector<4x8xf32> to vector<1x8xf32>
    %99 = vector.broadcast %97 : vector<1x8xf32> to vector<8x8xf32>
    %100 = arith.mulf %96, %99 : vector<8x8xf32>
    %cst_44 = arith.constant dense<0.000000e+00> : vector<8xf32>
    %101 = vector.multi_reduction <add>, %100, %cst_44 [1] : vector<8x8xf32> to vector<8xf32>
    %102 = vector.shape_cast %101 : vector<8xf32> to vector<8x1xf32>
    %cst_45 = arith.constant dense<0.000000e+00> : vector<1x8xf32>
    %103 = tpu.matmul %98, %96, %cst_45 {dimension_numbers = #tpu.dot_dimension_numbers<[1], [1], [0], [0], [0, 0, 1, 0], [], []>} : vector<1x8xf32>, vector<8x8xf32>, vector<1x8xf32> -> vector<1x8xf32>
    %104 = vector.broadcast %102 : vector<8x1xf32> to vector<8x8xf32>
    %105 = vector.broadcast %103 : vector<1x8xf32> to vector<8x8xf32>
    %106 = arith.addf %104, %105 : vector<8x8xf32>
    %cst_46 = arith.constant 0.000000e+00 : f32
    %107 = vector.broadcast %cst_46 : f32 to vector<8x8xf32>
    %108 = arith.cmpf ogt, %106, %107 : vector<8x8xf32>
    %cst_47 = arith.constant 2.000000e-01 : f32
    %109 = vector.broadcast %cst_47 : f32 to vector<8x8xf32>
    %110 = arith.mulf %109, %106 : vector<8x8xf32>
    %111 = arith.select %108, %106, %110 : vector<8x8xi1>, vector<8x8xf32>
    %cst_48 = arith.constant 0.000000e+00 : f32
    %112 = vector.broadcast %cst_48 : f32 to vector<8x8xf32>
    %113 = arith.cmpf ogt, %21, %112 : vector<8x8xf32>
    %cst_49 = arith.constant -1.000000e+09 : f32
    %114 = vector.broadcast %cst_49 : f32 to vector<8x8xf32>
    %115 = arith.select %113, %111, %114 : vector<8x8xi1>, vector<8x8xf32>
    %cst_50 = arith.constant dense<0xFF800000> : vector<8xf32>
    %116 = vector.multi_reduction <maximumf>, %115, %cst_50 [1] : vector<8x8xf32> to vector<8xf32>
    %117 = vector.shape_cast %116 : vector<8xf32> to vector<8x1xf32>
    %118 = vector.broadcast %117 : vector<8x1xf32> to vector<8x8xf32>
    %119 = arith.subf %115, %118 : vector<8x8xf32>
    %120 = math.exp %119 : vector<8x8xf32>
    %cst_51 = arith.constant dense<0.000000e+00> : vector<8xf32>
    %121 = vector.multi_reduction <add>, %120, %cst_51 [1] : vector<8x8xf32> to vector<8xf32>
    %122 = vector.shape_cast %121 : vector<8xf32> to vector<8x1xf32>
    %123 = vector.broadcast %122 : vector<8x1xf32> to vector<8x8xf32>
    %124 = arith.divf %120, %123 : vector<8x8xf32>
    %125 = vector.extract_strided_slice %28 {offsets = [2, 0, 0], sizes = [1, 8, 8], strides = [1, 1, 1]} : vector<4x8x8xf32> to vector<1x8x8xf32>
    %126 = vector.shape_cast %125 : vector<1x8x8xf32> to vector<8x8xf32>
    %127 = arith.mulf %124, %126 : vector<8x8xf32>
    %cst_52 = arith.constant dense<0.000000e+00> : vector<8x8xf32>
    %128 = tpu.matmul %127, %96, %cst_52 {dimension_numbers = #tpu.dot_dimension_numbers<[1], [0], [0], [1], [0, 0, 1, 1], [], []>} : vector<8x8xf32>, vector<8x8xf32>, vector<8x8xf32> -> vector<8x8xf32>
    %129 = vector.extract_strided_slice %29 {offsets = [0, 24], sizes = [8, 8], strides = [1, 1]} : vector<8x32xf32> to vector<8x8xf32>
    %130 = vector.extract_strided_slice %26 {offsets = [3, 0], sizes = [1, 8], strides = [1, 1]} : vector<4x8xf32> to vector<1x8xf32>
    %131 = vector.extract_strided_slice %25 {offsets = [3, 0], sizes = [1, 8], strides = [1, 1]} : vector<4x8xf32> to vector<1x8xf32>
    %132 = vector.broadcast %130 : vector<1x8xf32> to vector<8x8xf32>
    %133 = arith.mulf %129, %132 : vector<8x8xf32>
    %cst_53 = arith.constant dense<0.000000e+00> : vector<8xf32>
    %134 = vector.multi_reduction <add>, %133, %cst_53 [1] : vector<8x8xf32> to vector<8xf32>
    %135 = vector.shape_cast %134 : vector<8xf32> to vector<8x1xf32>
    %cst_54 = arith.constant dense<0.000000e+00> : vector<1x8xf32>
    %136 = tpu.matmul %131, %129, %cst_54 {dimension_numbers = #tpu.dot_dimension_numbers<[1], [1], [0], [0], [0, 0, 1, 0], [], []>} : vector<1x8xf32>, vector<8x8xf32>, vector<1x8xf32> -> vector<1x8xf32>
    %137 = vector.broadcast %135 : vector<8x1xf32> to vector<8x8xf32>
    %138 = vector.broadcast %136 : vector<1x8xf32> to vector<8x8xf32>
    %139 = arith.addf %137, %138 : vector<8x8xf32>
    %cst_55 = arith.constant 0.000000e+00 : f32
    %140 = vector.broadcast %cst_55 : f32 to vector<8x8xf32>
    %141 = arith.cmpf ogt, %139, %140 : vector<8x8xf32>
    %cst_56 = arith.constant 2.000000e-01 : f32
    %142 = vector.broadcast %cst_56 : f32 to vector<8x8xf32>
    %143 = arith.mulf %142, %139 : vector<8x8xf32>
    %144 = arith.select %141, %139, %143 : vector<8x8xi1>, vector<8x8xf32>
    %cst_57 = arith.constant 0.000000e+00 : f32
    %145 = vector.broadcast %cst_57 : f32 to vector<8x8xf32>
    %146 = arith.cmpf ogt, %21, %145 : vector<8x8xf32>
    %cst_58 = arith.constant -1.000000e+09 : f32
    %147 = vector.broadcast %cst_58 : f32 to vector<8x8xf32>
    %148 = arith.select %146, %144, %147 : vector<8x8xi1>, vector<8x8xf32>
    %cst_59 = arith.constant dense<0xFF800000> : vector<8xf32>
    %149 = vector.multi_reduction <maximumf>, %148, %cst_59 [1] : vector<8x8xf32> to vector<8xf32>
    %150 = vector.shape_cast %149 : vector<8xf32> to vector<8x1xf32>
    %151 = vector.broadcast %150 : vector<8x1xf32> to vector<8x8xf32>
    %152 = arith.subf %148, %151 : vector<8x8xf32>
    %153 = math.exp %152 : vector<8x8xf32>
    %cst_60 = arith.constant dense<0.000000e+00> : vector<8xf32>
    %154 = vector.multi_reduction <add>, %153, %cst_60 [1] : vector<8x8xf32> to vector<8xf32>
    %155 = vector.shape_cast %154 : vector<8xf32> to vector<8x1xf32>
    %156 = vector.broadcast %155 : vector<8x1xf32> to vector<8x8xf32>
    %157 = arith.divf %153, %156 : vector<8x8xf32>
    %158 = vector.extract_strided_slice %28 {offsets = [3, 0, 0], sizes = [1, 8, 8], strides = [1, 1, 1]} : vector<4x8x8xf32> to vector<1x8x8xf32>
    %159 = vector.shape_cast %158 : vector<1x8x8xf32> to vector<8x8xf32>
    %160 = arith.mulf %157, %159 : vector<8x8xf32>
    %cst_61 = arith.constant dense<0.000000e+00> : vector<8x8xf32>
    %161 = tpu.matmul %160, %129, %cst_61 {dimension_numbers = #tpu.dot_dimension_numbers<[1], [0], [0], [1], [0, 0, 1, 1], [], []>} : vector<8x8xf32>, vector<8x8xf32>, vector<8x8xf32> -> vector<8x8xf32>
    %162 = tpu.concatenate %62, %95, %128, %161 in 1 : vector<8x8xf32>, vector<8x8xf32>, vector<8x8xf32>, vector<8x8xf32> -> vector<8x32xf32>
    %163 = vector.broadcast %27 : vector<1x32xf32> to vector<8x32xf32>
    %164 = arith.addf %162, %163 : vector<8x32xf32>
    %cst_62 = arith.constant 0.000000e+00 : f32
    %165 = vector.broadcast %cst_62 : f32 to vector<8x32xf32>
    %166 = arith.cmpf ogt, %164, %165 : vector<8x32xf32>
    %cst_63 = arith.constant 0.000000e+00 : f32
    %167 = vector.broadcast %cst_63 : f32 to vector<8x32xf32>
    %168 = arith.minimumf %164, %167 : vector<8x32xf32>
    %169 = math.exp %168 : vector<8x32xf32>
    %cst_64 = arith.constant 1.000000e+00 : f32
    %170 = vector.broadcast %cst_64 : f32 to vector<8x32xf32>
    %171 = arith.subf %169, %170 : vector<8x32xf32>
    %172 = arith.select %166, %164, %171 : vector<8x32xi1>, vector<8x32xf32>
    %c0_65 = arith.constant 0 : index
    %c0_66 = arith.constant 0 : index
    %173 = vector.load %arg18[%c0_65, %c0_66] : memref<8x32xf32, #tpu.memory_space<vmem>>, vector<8x32xf32>
    %174 = arith.mulf %172, %173 : vector<8x32xf32>
    %c0_67 = arith.constant 0 : index
    %c0_68 = arith.constant 0 : index
    %175 = vector.load %arg7[%c0_67, %c0_68] : memref<32x16xf32, #tpu.memory_space<vmem>>, vector<32x16xf32>
    %c0_69 = arith.constant 0 : index
    %c0_70 = arith.constant 0 : index
    %176 = vector.load %arg8[%c0_69, %c0_70] : memref<1x16xf32, #tpu.memory_space<vmem>>, vector<1x16xf32>
    %c0_71 = arith.constant 0 : index
    %c0_72 = arith.constant 0 : index
    %177 = vector.load %arg9[%c0_71, %c0_72] : memref<1x16xf32, #tpu.memory_space<vmem>>, vector<1x16xf32>
    %c0_73 = arith.constant 0 : index
    %c0_74 = arith.constant 0 : index
    %178 = vector.load %arg10[%c0_73, %c0_74] : memref<1x16xf32, #tpu.memory_space<vmem>>, vector<1x16xf32>
    %c0_75 = arith.constant 0 : index
    %c0_76 = arith.constant 0 : index
    %c0_77 = arith.constant 0 : index
    %179 = vector.load %arg19[%c0_75, %c0_76, %c0_77] : memref<1x8x8xf32, #tpu.memory_space<vmem>>, vector<1x8x8xf32>
    %cst_78 = arith.constant dense<0.000000e+00> : vector<8x16xf32>
    %180 = tpu.matmul %174, %175, %cst_78 {dimension_numbers = #tpu.dot_dimension_numbers<[1], [0], [0], [1], [0, 0, 1, 1], [], []>} : vector<8x32xf32>, vector<32x16xf32>, vector<8x16xf32> -> vector<8x16xf32>
    %181 = vector.broadcast %177 : vector<1x16xf32> to vector<8x16xf32>
    %182 = arith.mulf %180, %181 : vector<8x16xf32>
    %cst_79 = arith.constant dense<0.000000e+00> : vector<8xf32>
    %183 = vector.multi_reduction <add>, %182, %cst_79 [1] : vector<8x16xf32> to vector<8xf32>
    %184 = vector.shape_cast %183 : vector<8xf32> to vector<8x1xf32>
    %cst_80 = arith.constant dense<0.000000e+00> : vector<1x8xf32>
    %185 = tpu.matmul %176, %180, %cst_80 {dimension_numbers = #tpu.dot_dimension_numbers<[1], [1], [0], [0], [0, 0, 1, 0], [], []>} : vector<1x16xf32>, vector<8x16xf32>, vector<1x8xf32> -> vector<1x8xf32>
    %186 = vector.broadcast %184 : vector<8x1xf32> to vector<8x8xf32>
    %187 = vector.broadcast %185 : vector<1x8xf32> to vector<8x8xf32>
    %188 = arith.addf %186, %187 : vector<8x8xf32>
    %cst_81 = arith.constant 0.000000e+00 : f32
    %189 = vector.broadcast %cst_81 : f32 to vector<8x8xf32>
    %190 = arith.cmpf ogt, %188, %189 : vector<8x8xf32>
    %cst_82 = arith.constant 2.000000e-01 : f32
    %191 = vector.broadcast %cst_82 : f32 to vector<8x8xf32>
    %192 = arith.mulf %191, %188 : vector<8x8xf32>
    %193 = arith.select %190, %188, %192 : vector<8x8xi1>, vector<8x8xf32>
    %cst_83 = arith.constant 0.000000e+00 : f32
    %194 = vector.broadcast %cst_83 : f32 to vector<8x8xf32>
    %195 = arith.cmpf ogt, %21, %194 : vector<8x8xf32>
    %cst_84 = arith.constant -1.000000e+09 : f32
    %196 = vector.broadcast %cst_84 : f32 to vector<8x8xf32>
    %197 = arith.select %195, %193, %196 : vector<8x8xi1>, vector<8x8xf32>
    %cst_85 = arith.constant dense<0xFF800000> : vector<8xf32>
    %198 = vector.multi_reduction <maximumf>, %197, %cst_85 [1] : vector<8x8xf32> to vector<8xf32>
    %199 = vector.shape_cast %198 : vector<8xf32> to vector<8x1xf32>
    %200 = vector.broadcast %199 : vector<8x1xf32> to vector<8x8xf32>
    %201 = arith.subf %197, %200 : vector<8x8xf32>
    %202 = math.exp %201 : vector<8x8xf32>
    %cst_86 = arith.constant dense<0.000000e+00> : vector<8xf32>
    %203 = vector.multi_reduction <add>, %202, %cst_86 [1] : vector<8x8xf32> to vector<8xf32>
    %204 = vector.shape_cast %203 : vector<8xf32> to vector<8x1xf32>
    %205 = vector.broadcast %204 : vector<8x1xf32> to vector<8x8xf32>
    %206 = arith.divf %202, %205 : vector<8x8xf32>
    %207 = vector.shape_cast %179 : vector<1x8x8xf32> to vector<8x8xf32>
    %208 = arith.mulf %206, %207 : vector<8x8xf32>
    %cst_87 = arith.constant dense<0.000000e+00> : vector<8x16xf32>
    %209 = tpu.matmul %208, %180, %cst_87 {dimension_numbers = #tpu.dot_dimension_numbers<[1], [0], [0], [1], [0, 0, 1, 1], [], []>} : vector<8x8xf32>, vector<8x16xf32>, vector<8x16xf32> -> vector<8x16xf32>
    %cst_88 = arith.constant 1.000000e+00 : f32
    %210 = vector.broadcast %cst_88 : f32 to vector<8x16xf32>
    %211 = arith.mulf %209, %210 : vector<8x16xf32>
    %212 = vector.broadcast %178 : vector<1x16xf32> to vector<8x16xf32>
    %213 = arith.addf %211, %212 : vector<8x16xf32>
    %c0_89 = arith.constant 0 : index
    %c0_90 = arith.constant 0 : index
    %214 = vector.load %arg11[%c0_89, %c0_90] : memref<16x128xf32, #tpu.memory_space<vmem>>, vector<16x128xf32>
    %cst_91 = arith.constant dense<0.000000e+00> : vector<8x128xf32>
    %215 = tpu.matmul %213, %214, %cst_91 {dimension_numbers = #tpu.dot_dimension_numbers<[1], [0], [0], [1], [0, 0, 1, 1], [], []>} : vector<8x16xf32>, vector<16x128xf32>, vector<8x128xf32> -> vector<8x128xf32>
    %c0_92 = arith.constant 0 : index
    %c0_93 = arith.constant 0 : index
    %216 = vector.load %arg13[%c0_92, %c0_93] : memref<1x128xf32, #tpu.memory_space<vmem>>, vector<1x128xf32>
    %217 = vector.broadcast %216 : vector<1x128xf32> to vector<8x128xf32>
    %218 = arith.addf %215, %217 : vector<8x128xf32>
    %c0_94 = arith.constant 0 : index
    %c0_95 = arith.constant 0 : index
    %219 = vector.load %arg21[%c0_94, %c0_95] : memref<8x128xf32, #tpu.memory_space<vmem>>, vector<8x128xf32>
    tpu.vector_store %arg21[%c0_94, %c0_95], %218 {strides = array<i32>} : memref<8x128xf32, #tpu.memory_space<vmem>>, vector<8x128xf32>,
    %cst_96 = arith.constant 0.000000e+00 : f32
    %220 = vector.broadcast %cst_96 : f32 to vector<1x32xf32>
    %cst_97 = arith.constant 0.000000e+00 : f32
    %221 = vector.broadcast %cst_97 : f32 to vector<1x32xf32>
    %c0_i32 = arith.constant 0 : i32
    %222 = arith.index_cast %c0_i32 : i32 to index
    %c0_98 = arith.constant 0 : index
    %223 = vector.load %arg21[%222, %c0_98] : memref<8x128xf32, #tpu.memory_space<vmem>>, vector<1x128xf32>
    %c0_99 = arith.constant 0 : index
    %c0_100 = arith.constant 0 : index
    %224 = vector.load %arg12[%c0_99, %c0_100] : memref<32x128xf32, #tpu.memory_space<vmem>>, vector<32x128xf32>
    %cst_101 = arith.constant dense<0.000000e+00> : vector<1x128xf32>
    %225 = tpu.matmul %220, %224, %cst_101 {dimension_numbers = #tpu.dot_dimension_numbers<[1], [0], [0], [1], [0, 0, 1, 1], [], []>} : vector<1x32xf32>, vector<32x128xf32>, vector<1x128xf32> -> vector<1x128xf32>
    %226 = arith.addf %223, %225 : vector<1x128xf32>
    %227 = vector.extract_strided_slice %226 {offsets = [0, 0], sizes = [1, 32], strides = [1, 1]} : vector<1x128xf32> to vector<1x32xf32>
    %228 = arith.negf %227 : vector<1x32xf32>
    %229 = math.exp %228 : vector<1x32xf32>
    %cst_102 = arith.constant 1.000000e+00 : f32
    %230 = vector.broadcast %cst_102 : f32 to vector<1x32xf32>
    %231 = arith.addf %230, %229 : vector<1x32xf32>
    %232 = arith.divf %230, %231 : vector<1x32xf32>
    %233 = vector.extract_strided_slice %226 {offsets = [0, 32], sizes = [1, 32], strides = [1, 1]} : vector<1x128xf32> to vector<1x32xf32>
    %234 = arith.negf %233 : vector<1x32xf32>
    %235 = math.exp %234 : vector<1x32xf32>
    %cst_103 = arith.constant 1.000000e+00 : f32
    %236 = vector.broadcast %cst_103 : f32 to vector<1x32xf32>
    %237 = arith.addf %236, %235 : vector<1x32xf32>
    %238 = arith.divf %236, %237 : vector<1x32xf32>
    %239 = vector.extract_strided_slice %226 {offsets = [0, 64], sizes = [1, 32], strides = [1, 1]} : vector<1x128xf32> to vector<1x32xf32>
    %240 = math.tanh %239 : vector<1x32xf32>
    %241 = vector.extract_strided_slice %226 {offsets = [0, 96], sizes = [1, 32], strides = [1, 1]} : vector<1x128xf32> to vector<1x32xf32>
    %242 = arith.negf %241 : vector<1x32xf32>
    %243 = math.exp %242 : vector<1x32xf32>
    %cst_104 = arith.constant 1.000000e+00 : f32
    %244 = vector.broadcast %cst_104 : f32 to vector<1x32xf32>
    %245 = arith.addf %244, %243 : vector<1x32xf32>
    %246 = arith.divf %244, %245 : vector<1x32xf32>
    %247 = arith.mulf %238, %221 : vector<1x32xf32>
    %248 = arith.mulf %232, %240 : vector<1x32xf32>
    %249 = arith.addf %247, %248 : vector<1x32xf32>
    %250 = math.tanh %249 : vector<1x32xf32>
    %251 = arith.mulf %246, %250 : vector<1x32xf32>
    %252 = arith.index_cast %c0_i32 : i32 to index
    %c0_105 = arith.constant 0 : index
    %253 = vector.load %arg22[%252, %c0_105] : memref<8x32xf32, #tpu.memory_space<vmem>>, vector<1x32xf32>
    tpu.vector_store %arg22[%252, %c0_105], %251 {strides = array<i32>} : memref<8x32xf32, #tpu.memory_space<vmem>>, vector<1x32xf32>,
    %c1_i32 = arith.constant 1 : i32
    %254 = arith.index_cast %c1_i32 : i32 to index
    %c0_106 = arith.constant 0 : index
    %255 = vector.load %arg21[%254, %c0_106] : memref<8x128xf32, #tpu.memory_space<vmem>>, vector<1x128xf32>
    %c0_107 = arith.constant 0 : index
    %c0_108 = arith.constant 0 : index
    %256 = vector.load %arg12[%c0_107, %c0_108] : memref<32x128xf32, #tpu.memory_space<vmem>>, vector<32x128xf32>
    %cst_109 = arith.constant dense<0.000000e+00> : vector<1x128xf32>
    %257 = tpu.matmul %251, %256, %cst_109 {dimension_numbers = #tpu.dot_dimension_numbers<[1], [0], [0], [1], [0, 0, 1, 1], [], []>} : vector<1x32xf32>, vector<32x128xf32>, vector<1x128xf32> -> vector<1x128xf32>
    %258 = arith.addf %255, %257 : vector<1x128xf32>
    %259 = vector.extract_strided_slice %258 {offsets = [0, 0], sizes = [1, 32], strides = [1, 1]} : vector<1x128xf32> to vector<1x32xf32>
    %260 = arith.negf %259 : vector<1x32xf32>
    %261 = math.exp %260 : vector<1x32xf32>
    %cst_110 = arith.constant 1.000000e+00 : f32
    %262 = vector.broadcast %cst_110 : f32 to vector<1x32xf32>
    %263 = arith.addf %262, %261 : vector<1x32xf32>
    %264 = arith.divf %262, %263 : vector<1x32xf32>
    %265 = vector.extract_strided_slice %258 {offsets = [0, 32], sizes = [1, 32], strides = [1, 1]} : vector<1x128xf32> to vector<1x32xf32>
    %266 = arith.negf %265 : vector<1x32xf32>
    %267 = math.exp %266 : vector<1x32xf32>
    %cst_111 = arith.constant 1.000000e+00 : f32
    %268 = vector.broadcast %cst_111 : f32 to vector<1x32xf32>
    %269 = arith.addf %268, %267 : vector<1x32xf32>
    %270 = arith.divf %268, %269 : vector<1x32xf32>
    %271 = vector.extract_strided_slice %258 {offsets = [0, 64], sizes = [1, 32], strides = [1, 1]} : vector<1x128xf32> to vector<1x32xf32>
    %272 = math.tanh %271 : vector<1x32xf32>
    %273 = vector.extract_strided_slice %258 {offsets = [0, 96], sizes = [1, 32], strides = [1, 1]} : vector<1x128xf32> to vector<1x32xf32>
    %274 = arith.negf %273 : vector<1x32xf32>
    %275 = math.exp %274 : vector<1x32xf32>
    %cst_112 = arith.constant 1.000000e+00 : f32
    %276 = vector.broadcast %cst_112 : f32 to vector<1x32xf32>
    %277 = arith.addf %276, %275 : vector<1x32xf32>
    %278 = arith.divf %276, %277 : vector<1x32xf32>
    %279 = arith.mulf %270, %249 : vector<1x32xf32>
    %280 = arith.mulf %264, %272 : vector<1x32xf32>
    %281 = arith.addf %279, %280 : vector<1x32xf32>
    %282 = math.tanh %281 : vector<1x32xf32>
    %283 = arith.mulf %278, %282 : vector<1x32xf32>
    %284 = arith.index_cast %c1_i32 : i32 to index
    %c0_113 = arith.constant 0 : index
    %285 = vector.load %arg22[%284, %c0_113] : memref<8x32xf32, #tpu.memory_space<vmem>>, vector<1x32xf32>
    tpu.vector_store %arg22[%284, %c0_113], %283 {strides = array<i32>} : memref<8x32xf32, #tpu.memory_space<vmem>>, vector<1x32xf32>,
    %c2_i32 = arith.constant 2 : i32
    %286 = arith.index_cast %c2_i32 : i32 to index
    %c0_114 = arith.constant 0 : index
    %287 = vector.load %arg21[%286, %c0_114] : memref<8x128xf32, #tpu.memory_space<vmem>>, vector<1x128xf32>
    %c0_115 = arith.constant 0 : index
    %c0_116 = arith.constant 0 : index
    %288 = vector.load %arg12[%c0_115, %c0_116] : memref<32x128xf32, #tpu.memory_space<vmem>>, vector<32x128xf32>
    %cst_117 = arith.constant dense<0.000000e+00> : vector<1x128xf32>
    %289 = tpu.matmul %283, %288, %cst_117 {dimension_numbers = #tpu.dot_dimension_numbers<[1], [0], [0], [1], [0, 0, 1, 1], [], []>} : vector<1x32xf32>, vector<32x128xf32>, vector<1x128xf32> -> vector<1x128xf32>
    %290 = arith.addf %287, %289 : vector<1x128xf32>
    %291 = vector.extract_strided_slice %290 {offsets = [0, 0], sizes = [1, 32], strides = [1, 1]} : vector<1x128xf32> to vector<1x32xf32>
    %292 = arith.negf %291 : vector<1x32xf32>
    %293 = math.exp %292 : vector<1x32xf32>
    %cst_118 = arith.constant 1.000000e+00 : f32
    %294 = vector.broadcast %cst_118 : f32 to vector<1x32xf32>
    %295 = arith.addf %294, %293 : vector<1x32xf32>
    %296 = arith.divf %294, %295 : vector<1x32xf32>
    %297 = vector.extract_strided_slice %290 {offsets = [0, 32], sizes = [1, 32], strides = [1, 1]} : vector<1x128xf32> to vector<1x32xf32>
    %298 = arith.negf %297 : vector<1x32xf32>
    %299 = math.exp %298 : vector<1x32xf32>
    %cst_119 = arith.constant 1.000000e+00 : f32
    %300 = vector.broadcast %cst_119 : f32 to vector<1x32xf32>
    %301 = arith.addf %300, %299 : vector<1x32xf32>
    %302 = arith.divf %300, %301 : vector<1x32xf32>
    %303 = vector.extract_strided_slice %290 {offsets = [0, 64], sizes = [1, 32], strides = [1, 1]} : vector<1x128xf32> to vector<1x32xf32>
    %304 = math.tanh %303 : vector<1x32xf32>
    %305 = vector.extract_strided_slice %290 {offsets = [0, 96], sizes = [1, 32], strides = [1, 1]} : vector<1x128xf32> to vector<1x32xf32>
    %306 = arith.negf %305 : vector<1x32xf32>
    %307 = math.exp %306 : vector<1x32xf32>
    %cst_120 = arith.constant 1.000000e+00 : f32
    %308 = vector.broadcast %cst_120 : f32 to vector<1x32xf32>
    %309 = arith.addf %308, %307 : vector<1x32xf32>
    %310 = arith.divf %308, %309 : vector<1x32xf32>
    %311 = arith.mulf %302, %281 : vector<1x32xf32>
    %312 = arith.mulf %296, %304 : vector<1x32xf32>
    %313 = arith.addf %311, %312 : vector<1x32xf32>
    %314 = math.tanh %313 : vector<1x32xf32>
    %315 = arith.mulf %310, %314 : vector<1x32xf32>
    %316 = arith.index_cast %c2_i32 : i32 to index
    %c0_121 = arith.constant 0 : index
    %317 = vector.load %arg22[%316, %c0_121] : memref<8x32xf32, #tpu.memory_space<vmem>>, vector<1x32xf32>
    tpu.vector_store %arg22[%316, %c0_121], %315 {strides = array<i32>} : memref<8x32xf32, #tpu.memory_space<vmem>>, vector<1x32xf32>,
    %c3_i32 = arith.constant 3 : i32
    %318 = arith.index_cast %c3_i32 : i32 to index
    %c0_122 = arith.constant 0 : index
    %319 = vector.load %arg21[%318, %c0_122] : memref<8x128xf32, #tpu.memory_space<vmem>>, vector<1x128xf32>
    %c0_123 = arith.constant 0 : index
    %c0_124 = arith.constant 0 : index
    %320 = vector.load %arg12[%c0_123, %c0_124] : memref<32x128xf32, #tpu.memory_space<vmem>>, vector<32x128xf32>
    %cst_125 = arith.constant dense<0.000000e+00> : vector<1x128xf32>
    %321 = tpu.matmul %315, %320, %cst_125 {dimension_numbers = #tpu.dot_dimension_numbers<[1], [0], [0], [1], [0, 0, 1, 1], [], []>} : vector<1x32xf32>, vector<32x128xf32>, vector<1x128xf32> -> vector<1x128xf32>
    %322 = arith.addf %319, %321 : vector<1x128xf32>
    %323 = vector.extract_strided_slice %322 {offsets = [0, 0], sizes = [1, 32], strides = [1, 1]} : vector<1x128xf32> to vector<1x32xf32>
    %324 = arith.negf %323 : vector<1x32xf32>
    %325 = math.exp %324 : vector<1x32xf32>
    %cst_126 = arith.constant 1.000000e+00 : f32
    %326 = vector.broadcast %cst_126 : f32 to vector<1x32xf32>
    %327 = arith.addf %326, %325 : vector<1x32xf32>
    %328 = arith.divf %326, %327 : vector<1x32xf32>
    %329 = vector.extract_strided_slice %322 {offsets = [0, 32], sizes = [1, 32], strides = [1, 1]} : vector<1x128xf32> to vector<1x32xf32>
    %330 = arith.negf %329 : vector<1x32xf32>
    %331 = math.exp %330 : vector<1x32xf32>
    %cst_127 = arith.constant 1.000000e+00 : f32
    %332 = vector.broadcast %cst_127 : f32 to vector<1x32xf32>
    %333 = arith.addf %332, %331 : vector<1x32xf32>
    %334 = arith.divf %332, %333 : vector<1x32xf32>
    %335 = vector.extract_strided_slice %322 {offsets = [0, 64], sizes = [1, 32], strides = [1, 1]} : vector<1x128xf32> to vector<1x32xf32>
    %336 = math.tanh %335 : vector<1x32xf32>
    %337 = vector.extract_strided_slice %322 {offsets = [0, 96], sizes = [1, 32], strides = [1, 1]} : vector<1x128xf32> to vector<1x32xf32>
    %338 = arith.negf %337 : vector<1x32xf32>
    %339 = math.exp %338 : vector<1x32xf32>
    %cst_128 = arith.constant 1.000000e+00 : f32
    %340 = vector.broadcast %cst_128 : f32 to vector<1x32xf32>
    %341 = arith.addf %340, %339 : vector<1x32xf32>
    %342 = arith.divf %340, %341 : vector<1x32xf32>
    %343 = arith.mulf %334, %313 : vector<1x32xf32>
    %344 = arith.mulf %328, %336 : vector<1x32xf32>
    %345 = arith.addf %343, %344 : vector<1x32xf32>
    %346 = math.tanh %345 : vector<1x32xf32>
    %347 = arith.mulf %342, %346 : vector<1x32xf32>
    %348 = arith.index_cast %c3_i32 : i32 to index
    %c0_129 = arith.constant 0 : index
    %349 = vector.load %arg22[%348, %c0_129] : memref<8x32xf32, #tpu.memory_space<vmem>>, vector<1x32xf32>
    tpu.vector_store %arg22[%348, %c0_129], %347 {strides = array<i32>} : memref<8x32xf32, #tpu.memory_space<vmem>>, vector<1x32xf32>,
    %c4_i32 = arith.constant 4 : i32
    %350 = arith.index_cast %c4_i32 : i32 to index
    %c0_130 = arith.constant 0 : index
    %351 = vector.load %arg21[%350, %c0_130] : memref<8x128xf32, #tpu.memory_space<vmem>>, vector<1x128xf32>
    %c0_131 = arith.constant 0 : index
    %c0_132 = arith.constant 0 : index
    %352 = vector.load %arg12[%c0_131, %c0_132] : memref<32x128xf32, #tpu.memory_space<vmem>>, vector<32x128xf32>
    %cst_133 = arith.constant dense<0.000000e+00> : vector<1x128xf32>
    %353 = tpu.matmul %347, %352, %cst_133 {dimension_numbers = #tpu.dot_dimension_numbers<[1], [0], [0], [1], [0, 0, 1, 1], [], []>} : vector<1x32xf32>, vector<32x128xf32>, vector<1x128xf32> -> vector<1x128xf32>
    %354 = arith.addf %351, %353 : vector<1x128xf32>
    %355 = vector.extract_strided_slice %354 {offsets = [0, 0], sizes = [1, 32], strides = [1, 1]} : vector<1x128xf32> to vector<1x32xf32>
    %356 = arith.negf %355 : vector<1x32xf32>
    %357 = math.exp %356 : vector<1x32xf32>
    %cst_134 = arith.constant 1.000000e+00 : f32
    %358 = vector.broadcast %cst_134 : f32 to vector<1x32xf32>
    %359 = arith.addf %358, %357 : vector<1x32xf32>
    %360 = arith.divf %358, %359 : vector<1x32xf32>
    %361 = vector.extract_strided_slice %354 {offsets = [0, 32], sizes = [1, 32], strides = [1, 1]} : vector<1x128xf32> to vector<1x32xf32>
    %362 = arith.negf %361 : vector<1x32xf32>
    %363 = math.exp %362 : vector<1x32xf32>
    %cst_135 = arith.constant 1.000000e+00 : f32
    %364 = vector.broadcast %cst_135 : f32 to vector<1x32xf32>
    %365 = arith.addf %364, %363 : vector<1x32xf32>
    %366 = arith.divf %364, %365 : vector<1x32xf32>
    %367 = vector.extract_strided_slice %354 {offsets = [0, 64], sizes = [1, 32], strides = [1, 1]} : vector<1x128xf32> to vector<1x32xf32>
    %368 = math.tanh %367 : vector<1x32xf32>
    %369 = vector.extract_strided_slice %354 {offsets = [0, 96], sizes = [1, 32], strides = [1, 1]} : vector<1x128xf32> to vector<1x32xf32>
    %370 = arith.negf %369 : vector<1x32xf32>
    %371 = math.exp %370 : vector<1x32xf32>
    %cst_136 = arith.constant 1.000000e+00 : f32
    %372 = vector.broadcast %cst_136 : f32 to vector<1x32xf32>
    %373 = arith.addf %372, %371 : vector<1x32xf32>
    %374 = arith.divf %372, %373 : vector<1x32xf32>
    %375 = arith.mulf %366, %345 : vector<1x32xf32>
    %376 = arith.mulf %360, %368 : vector<1x32xf32>
    %377 = arith.addf %375, %376 : vector<1x32xf32>
    %378 = math.tanh %377 : vector<1x32xf32>
    %379 = arith.mulf %374, %378 : vector<1x32xf32>
    %380 = arith.index_cast %c4_i32 : i32 to index
    %c0_137 = arith.constant 0 : index
    %381 = vector.load %arg22[%380, %c0_137] : memref<8x32xf32, #tpu.memory_space<vmem>>, vector<1x32xf32>
    tpu.vector_store %arg22[%380, %c0_137], %379 {strides = array<i32>} : memref<8x32xf32, #tpu.memory_space<vmem>>, vector<1x32xf32>,
    %c5_i32 = arith.constant 5 : i32
    %382 = arith.index_cast %c5_i32 : i32 to index
    %c0_138 = arith.constant 0 : index
    %383 = vector.load %arg21[%382, %c0_138] : memref<8x128xf32, #tpu.memory_space<vmem>>, vector<1x128xf32>
    %c0_139 = arith.constant 0 : index
    %c0_140 = arith.constant 0 : index
    %384 = vector.load %arg12[%c0_139, %c0_140] : memref<32x128xf32, #tpu.memory_space<vmem>>, vector<32x128xf32>
    %cst_141 = arith.constant dense<0.000000e+00> : vector<1x128xf32>
    %385 = tpu.matmul %379, %384, %cst_141 {dimension_numbers = #tpu.dot_dimension_numbers<[1], [0], [0], [1], [0, 0, 1, 1], [], []>} : vector<1x32xf32>, vector<32x128xf32>, vector<1x128xf32> -> vector<1x128xf32>
    %386 = arith.addf %383, %385 : vector<1x128xf32>
    %387 = vector.extract_strided_slice %386 {offsets = [0, 0], sizes = [1, 32], strides = [1, 1]} : vector<1x128xf32> to vector<1x32xf32>
    %388 = arith.negf %387 : vector<1x32xf32>
    %389 = math.exp %388 : vector<1x32xf32>
    %cst_142 = arith.constant 1.000000e+00 : f32
    %390 = vector.broadcast %cst_142 : f32 to vector<1x32xf32>
    %391 = arith.addf %390, %389 : vector<1x32xf32>
    %392 = arith.divf %390, %391 : vector<1x32xf32>
    %393 = vector.extract_strided_slice %386 {offsets = [0, 32], sizes = [1, 32], strides = [1, 1]} : vector<1x128xf32> to vector<1x32xf32>
    %394 = arith.negf %393 : vector<1x32xf32>
    %395 = math.exp %394 : vector<1x32xf32>
    %cst_143 = arith.constant 1.000000e+00 : f32
    %396 = vector.broadcast %cst_143 : f32 to vector<1x32xf32>
    %397 = arith.addf %396, %395 : vector<1x32xf32>
    %398 = arith.divf %396, %397 : vector<1x32xf32>
    %399 = vector.extract_strided_slice %386 {offsets = [0, 64], sizes = [1, 32], strides = [1, 1]} : vector<1x128xf32> to vector<1x32xf32>
    %400 = math.tanh %399 : vector<1x32xf32>
    %401 = vector.extract_strided_slice %386 {offsets = [0, 96], sizes = [1, 32], strides = [1, 1]} : vector<1x128xf32> to vector<1x32xf32>
    %402 = arith.negf %401 : vector<1x32xf32>
    %403 = math.exp %402 : vector<1x32xf32>
    %cst_144 = arith.constant 1.000000e+00 : f32
    %404 = vector.broadcast %cst_144 : f32 to vector<1x32xf32>
    %405 = arith.addf %404, %403 : vector<1x32xf32>
    %406 = arith.divf %404, %405 : vector<1x32xf32>
    %407 = arith.mulf %398, %377 : vector<1x32xf32>
    %408 = arith.mulf %392, %400 : vector<1x32xf32>
    %409 = arith.addf %407, %408 : vector<1x32xf32>
    %410 = math.tanh %409 : vector<1x32xf32>
    %411 = arith.mulf %406, %410 : vector<1x32xf32>
    %412 = arith.index_cast %c5_i32 : i32 to index
    %c0_145 = arith.constant 0 : index
    %413 = vector.load %arg22[%412, %c0_145] : memref<8x32xf32, #tpu.memory_space<vmem>>, vector<1x32xf32>
    tpu.vector_store %arg22[%412, %c0_145], %411 {strides = array<i32>} : memref<8x32xf32, #tpu.memory_space<vmem>>, vector<1x32xf32>,
    %c6_i32 = arith.constant 6 : i32
    %414 = arith.index_cast %c6_i32 : i32 to index
    %c0_146 = arith.constant 0 : index
    %415 = vector.load %arg21[%414, %c0_146] : memref<8x128xf32, #tpu.memory_space<vmem>>, vector<1x128xf32>
    %c0_147 = arith.constant 0 : index
    %c0_148 = arith.constant 0 : index
    %416 = vector.load %arg12[%c0_147, %c0_148] : memref<32x128xf32, #tpu.memory_space<vmem>>, vector<32x128xf32>
    %cst_149 = arith.constant dense<0.000000e+00> : vector<1x128xf32>
    %417 = tpu.matmul %411, %416, %cst_149 {dimension_numbers = #tpu.dot_dimension_numbers<[1], [0], [0], [1], [0, 0, 1, 1], [], []>} : vector<1x32xf32>, vector<32x128xf32>, vector<1x128xf32> -> vector<1x128xf32>
    %418 = arith.addf %415, %417 : vector<1x128xf32>
    %419 = vector.extract_strided_slice %418 {offsets = [0, 0], sizes = [1, 32], strides = [1, 1]} : vector<1x128xf32> to vector<1x32xf32>
    %420 = arith.negf %419 : vector<1x32xf32>
    %421 = math.exp %420 : vector<1x32xf32>
    %cst_150 = arith.constant 1.000000e+00 : f32
    %422 = vector.broadcast %cst_150 : f32 to vector<1x32xf32>
    %423 = arith.addf %422, %421 : vector<1x32xf32>
    %424 = arith.divf %422, %423 : vector<1x32xf32>
    %425 = vector.extract_strided_slice %418 {offsets = [0, 32], sizes = [1, 32], strides = [1, 1]} : vector<1x128xf32> to vector<1x32xf32>
    %426 = arith.negf %425 : vector<1x32xf32>
    %427 = math.exp %426 : vector<1x32xf32>
    %cst_151 = arith.constant 1.000000e+00 : f32
    %428 = vector.broadcast %cst_151 : f32 to vector<1x32xf32>
    %429 = arith.addf %428, %427 : vector<1x32xf32>
    %430 = arith.divf %428, %429 : vector<1x32xf32>
    %431 = vector.extract_strided_slice %418 {offsets = [0, 64], sizes = [1, 32], strides = [1, 1]} : vector<1x128xf32> to vector<1x32xf32>
    %432 = math.tanh %431 : vector<1x32xf32>
    %433 = vector.extract_strided_slice %418 {offsets = [0, 96], sizes = [1, 32], strides = [1, 1]} : vector<1x128xf32> to vector<1x32xf32>
    %434 = arith.negf %433 : vector<1x32xf32>
    %435 = math.exp %434 : vector<1x32xf32>
    %cst_152 = arith.constant 1.000000e+00 : f32
    %436 = vector.broadcast %cst_152 : f32 to vector<1x32xf32>
    %437 = arith.addf %436, %435 : vector<1x32xf32>
    %438 = arith.divf %436, %437 : vector<1x32xf32>
    %439 = arith.mulf %430, %409 : vector<1x32xf32>
    %440 = arith.mulf %424, %432 : vector<1x32xf32>
    %441 = arith.addf %439, %440 : vector<1x32xf32>
    %442 = math.tanh %441 : vector<1x32xf32>
    %443 = arith.mulf %438, %442 : vector<1x32xf32>
    %444 = arith.index_cast %c6_i32 : i32 to index
    %c0_153 = arith.constant 0 : index
    %445 = vector.load %arg22[%444, %c0_153] : memref<8x32xf32, #tpu.memory_space<vmem>>, vector<1x32xf32>
    tpu.vector_store %arg22[%444, %c0_153], %443 {strides = array<i32>} : memref<8x32xf32, #tpu.memory_space<vmem>>, vector<1x32xf32>,
    %c7_i32 = arith.constant 7 : i32
    %446 = arith.index_cast %c7_i32 : i32 to index
    %c0_154 = arith.constant 0 : index
    %447 = vector.load %arg21[%446, %c0_154] : memref<8x128xf32, #tpu.memory_space<vmem>>, vector<1x128xf32>
    %c0_155 = arith.constant 0 : index
    %c0_156 = arith.constant 0 : index
    %448 = vector.load %arg12[%c0_155, %c0_156] : memref<32x128xf32, #tpu.memory_space<vmem>>, vector<32x128xf32>
    %cst_157 = arith.constant dense<0.000000e+00> : vector<1x128xf32>
    %449 = tpu.matmul %443, %448, %cst_157 {dimension_numbers = #tpu.dot_dimension_numbers<[1], [0], [0], [1], [0, 0, 1, 1], [], []>} : vector<1x32xf32>, vector<32x128xf32>, vector<1x128xf32> -> vector<1x128xf32>
    %450 = arith.addf %447, %449 : vector<1x128xf32>
    %451 = vector.extract_strided_slice %450 {offsets = [0, 0], sizes = [1, 32], strides = [1, 1]} : vector<1x128xf32> to vector<1x32xf32>
    %452 = arith.negf %451 : vector<1x32xf32>
    %453 = math.exp %452 : vector<1x32xf32>
    %cst_158 = arith.constant 1.000000e+00 : f32
    %454 = vector.broadcast %cst_158 : f32 to vector<1x32xf32>
    %455 = arith.addf %454, %453 : vector<1x32xf32>
    %456 = arith.divf %454, %455 : vector<1x32xf32>
    %457 = vector.extract_strided_slice %450 {offsets = [0, 32], sizes = [1, 32], strides = [1, 1]} : vector<1x128xf32> to vector<1x32xf32>
    %458 = arith.negf %457 : vector<1x32xf32>
    %459 = math.exp %458 : vector<1x32xf32>
    %cst_159 = arith.constant 1.000000e+00 : f32
    %460 = vector.broadcast %cst_159 : f32 to vector<1x32xf32>
    %461 = arith.addf %460, %459 : vector<1x32xf32>
    %462 = arith.divf %460, %461 : vector<1x32xf32>
    %463 = vector.extract_strided_slice %450 {offsets = [0, 64], sizes = [1, 32], strides = [1, 1]} : vector<1x128xf32> to vector<1x32xf32>
    %464 = math.tanh %463 : vector<1x32xf32>
    %465 = vector.extract_strided_slice %450 {offsets = [0, 96], sizes = [1, 32], strides = [1, 1]} : vector<1x128xf32> to vector<1x32xf32>
    %466 = arith.negf %465 : vector<1x32xf32>
    %467 = math.exp %466 : vector<1x32xf32>
    %cst_160 = arith.constant 1.000000e+00 : f32
    %468 = vector.broadcast %cst_160 : f32 to vector<1x32xf32>
    %469 = arith.addf %468, %467 : vector<1x32xf32>
    %470 = arith.divf %468, %469 : vector<1x32xf32>
    %471 = arith.mulf %462, %441 : vector<1x32xf32>
    %472 = arith.mulf %456, %464 : vector<1x32xf32>
    %473 = arith.addf %471, %472 : vector<1x32xf32>
    %474 = math.tanh %473 : vector<1x32xf32>
    %475 = arith.mulf %470, %474 : vector<1x32xf32>
    %476 = arith.index_cast %c7_i32 : i32 to index
    %c0_161 = arith.constant 0 : index
    %477 = vector.load %arg22[%476, %c0_161] : memref<8x32xf32, #tpu.memory_space<vmem>>, vector<1x32xf32>
    tpu.vector_store %arg22[%476, %c0_161], %475 {strides = array<i32>} : memref<8x32xf32, #tpu.memory_space<vmem>>, vector<1x32xf32>,
    %c8_i32 = arith.constant 8 : i32
    %c0_162 = arith.constant 0 : index
    %c0_163 = arith.constant 0 : index
    %478 = vector.load %arg22[%c0_162, %c0_163] : memref<8x32xf32, #tpu.memory_space<vmem>>, vector<8x32xf32>
    %c0_164 = arith.constant 0 : index
    %c0_165 = arith.constant 0 : index
    %479 = vector.load %arg14[%c0_164, %c0_165] : memref<32x2xf32, #tpu.memory_space<vmem>>, vector<32x2xf32>
    %cst_166 = arith.constant dense<0.000000e+00> : vector<8x2xf32>
    %480 = tpu.matmul %478, %479, %cst_166 {dimension_numbers = #tpu.dot_dimension_numbers<[1], [0], [0], [1], [0, 0, 1, 1], [], []>} : vector<8x32xf32>, vector<32x2xf32>, vector<8x2xf32> -> vector<8x2xf32>
    %c0_167 = arith.constant 0 : index
    %c0_168 = arith.constant 0 : index
    %481 = vector.load %arg15[%c0_167, %c0_168] : memref<1x2xf32, #tpu.memory_space<vmem>>, vector<1x2xf32>
    %482 = vector.broadcast %481 : vector<1x2xf32> to vector<8x2xf32>
    %483 = arith.addf %480, %482 : vector<8x2xf32>
    %c0_169 = arith.constant 0 : index
    %c0_170 = arith.constant 0 : index
    %484 = vector.load %arg20[%c0_169, %c0_170] : memref<8x2xf32, #tpu.memory_space<vmem>>, vector<8x2xf32>
    tpu.vector_store %arg20[%c0_169, %c0_170], %483 {strides = array<i32>} : memref<8x2xf32, #tpu.memory_space<vmem>>, vector<8x2xf32>,
    return
  }
}

</mosaic_0001>

<bundles_post_ra>
// kernel: tpu_custom_call.1
= control target key start
LH: loop header
LB: loop body
LE: loop exit
PB: predicated region body
PF: predicated region fallthrough
CT: control target
= control target key end

     0   :  { %s2725_s0 = inlined_call_operand.hbm [shape: f32[8,64,128], index: 0, kind: input, shape index: {}]   ;;  %s2726_s1 = inlined_call_operand.vmem [shape: f32[128,256], index: 1, kind: input, shape index: {}]   ;;  %s2727_s2 = inlined_call_operand.hbm [shape: f32[1,256], index: 2, kind: input, shape index: {}]   ;;  %s2728_s3 = inlined_call_operand.vmem [shape: f32[256,32], index: 3, kind: input, shape index: {}]   ;;  %s2729_s4 = inlined_call_operand.hbm [shape: f32[4,8], index: 4, kind: input, shape index: {}]   ;;  %s2730_s5 = inlined_call_operand.hbm [shape: f32[4,8], index: 5, kind: input, shape index: {}]   ;;  %s2731_s6 = inlined_call_operand.vmem [shape: f32[1,32], index: 6, kind: input, shape index: {}]   ;;  %s2732_s7 = inlined_call_operand.vmem [shape: f32[32,16], index: 7, kind: input, shape index: {}]   ;;  %s2733_s8 = inlined_call_operand.hbm [shape: f32[1,16], index: 8, kind: input, shape index: {}]   ;;  %s2734_s9 = inlined_call_operand.hbm [shape: f32[1,16], index: 9, kind: input, shape index: {}]   ;;  %s2735_s10 = inlined_call_operand.hbm [shape: f32[1,16], index: 10, kind: input, shape index: {}]   ;;  %s2736_s11 = inlined_call_operand.vmem [shape: f32[16,128], index: 11, kind: input, shape index: {}]   ;;  %s2737_s12 = inlined_call_operand.vmem [shape: f32[32,128], index: 12, kind: input, shape index: {}]   ;;  %s2738_s13 = inlined_call_operand.hbm [shape: f32[1,128], index: 13, kind: input, shape index: {}]   ;;  %s2739_s14 = inlined_call_operand.vmem [shape: f32[32,2], index: 14, kind: input, shape index: {}]   ;;  %s2740_s15 = inlined_call_operand.vmem [shape: f32[1,2], index: 15, kind: input, shape index: {}]   ;;  %s2741_s16 = inlined_call_operand.hbm [shape: f32[8,256], index: 16, kind: input, shape index: {}]   ;;  %s2742_s17 = inlined_call_operand.vmem [shape: f32[4,8,8], index: 17, kind: input, shape index: {}]   ;;  %s2743_s18 = inlined_call_operand.vmem [shape: f32[8,32], index: 18, kind: input, shape index: {}]   ;;  %s2744_s19 = inlined_call_operand.hbm [shape: f32[1,8,8], index: 19, kind: input, shape index: {}]   ;;  %s2745_s20 = inlined_call_operand.vmem [shape: f32[8,2], index: 20, kind: output, shape index: {}]  }
   0x1   :  { %2748 = sst [smem:[#allocation26_spill]] %s2725_s0 }
   0x2   :  { %2749 = sst [smem:[#allocation27_spill]] %s2726_s1 }
   0x3   :  { %2750 = sst [smem:[#allocation28_spill]] %s2727_s2 }
   0x4   :  { %2751 = sst [smem:[#allocation29_spill]] %s2728_s3 }
   0x5   :  { %2752 = sst [smem:[#allocation30_spill]] %s2729_s4 }
   0x6   :  { %25 = vsyncpa [#allocation5], 0 }
   0x7   :  { %26 = vsyncpa [#allocation7], 0 }
   0x8   :  { %27 = vsyncpa [#allocation10], 0 }
   0x9   :  { %28 = vsyncpa [#allocation13], 0 }
   0xa   :  { %29 = vsyncpa [#allocation16], 0  ;;  %s2753_s23 = sld [smem:[#allocation28_spill]] }
  0x10   :  { %s51_s24 = sshll.u32 %s2753_s23, 4  ;;  %s52_s24 = int_to_ptr.hbm [resolvable:$true] %s51_s24 }
  0x11   :  { %30 = vsyncpa [#allocation19], 0  ;;  %s2183_s2 = smov [#allocation6]   ;;  %s75_s27 = sshll.u32 %s2730_s5, 4  ;;  %s76_s27 = int_to_ptr.hbm [resolvable:$true] %s75_s27 }
  0x12   :  { %s53_s25 = sshll.u32 %s2183_s2, 4  ;;  %s2184_s28 = smov [#allocation9]   ;;  %s54_s25 = int_to_ptr.vmem [resolvable:$true] %s53_s25 }
  0x13   :  { %56 = dma.hbm_to_vmem [thread:$0]  %s52_s24, 32, %s54_s25, [#allocation7]  }
  0x14   :  { %s77_s4 = sshll.u32 %s2184_s28, 4  ;;  %s101_s0 = sshll.u32 %s2734_s9, 4  ;;  %s78_s4 = int_to_ptr.vmem [resolvable:$true] %s77_s4  ;;  %s102_s0 = int_to_ptr.hbm [resolvable:$true] %s101_s0 }
  0x15   :  { %80 = dma.hbm_to_vmem [thread:$0]  %s76_s27, 64, %s78_s4, [#allocation10]  }
  0x16   :  { %s127_s22 = sshll.u32 %s2738_s13, 4  ;;  %s2185_s23 = smov [#allocation12]   ;;  %s128_s22 = int_to_ptr.hbm [resolvable:$true] %s127_s22 }
  0x17   :  { %s103_s2 = sshll.u32 %s2185_s23, 4  ;;  %s2186_s5 = smov [#allocation15]   ;;  %s104_s2 = int_to_ptr.vmem [resolvable:$true] %s103_s2 }
  0x18   :  { %106 = dma.hbm_to_vmem [thread:$0]  %s102_s0, 16, %s104_s2, [#allocation13]  }
  0x19   :  { %s129_s24 = sshll.u32 %s2186_s5, 4  ;;  %s2754_s26 = sld [smem:[#allocation26_spill]]  ;;  %s130_s24 = int_to_ptr.vmem [resolvable:$true] %s129_s24 }
  0x1a   :  { %132 = dma.hbm_to_vmem [thread:$0]  %s128_s22, 16, %s130_s24, [#allocation16]  }
  0x1b   :  { %s2187_s9 = smov [#allocation4]   ;;  %s2755_s13 = sld [smem:[#allocation30_spill]] }
  0x1c   :  { %s37_s27 = sshll.u32 %s2187_s9, 4  ;;  %s2188_s21 = smov 128   ;;  %s38_s27 = int_to_ptr.vmem [resolvable:$true] %s37_s27 }
  0x1d   :  { %s2189_s1 = smov 8   ;;  %s2190_s0 = smov [#allocation8]  }
  0x1e   :  { %s66_s23 = sshll.u32 %s2190_s0, 4  ;;  %s90_s25 = sshll.u32 %s2733_s8, 4  ;;  %s67_s23 = int_to_ptr.vmem [resolvable:$true] %s66_s23  ;;  %s91_s25 = int_to_ptr.hbm [resolvable:$true] %s90_s25 }
  0x1f   :  { %s35_s28 = sshll.u32 %s2754_s26, 4  ;;  %s112_s3 = sshll.u32 %s2735_s10, 4  ;;  %s36_s28 = int_to_ptr.hbm [resolvable:$true] %s35_s28  ;;  %s113_s3 = int_to_ptr.hbm [resolvable:$true] %s112_s3 }
  0x20   :  { %43 = dma.hbm_to_vmem [thread:$0]  %s36_s28, 8192, %s38_s27, [#allocation5], %s2188_s21, %s2188_s21, %s2189_s1  }
  0x21   :  { %s64_s30 = sshll.u32 %s2755_s13, 4  ;;  %s2191_s26 = smov [#allocation11]   ;;  %s65_s30 = int_to_ptr.hbm [resolvable:$true] %s64_s30 }
  0x22   :  { %69 = dma.hbm_to_vmem [thread:$0]  %s65_s30, 64, %s67_s23, [#allocation7]  }
  0x23   :  { %s92_s9 = sshll.u32 %s2191_s26, 4  ;;  %s2192_s28 = smov [#allocation14]   ;;  %s93_s9 = int_to_ptr.vmem [resolvable:$true] %s92_s9 }
  0x24   :  { %95 = dma.hbm_to_vmem [thread:$0]  %s91_s25, 16, %s93_s9, [#allocation10]  }
  0x25   :  { %s114_s27 = sshll.u32 %s2192_s28, 4  ;;  %s142_s13 = sshll.u32 %s2741_s16, 4  ;;  %s115_s27 = int_to_ptr.vmem [resolvable:$true] %s114_s27  ;;  %s143_s13 = int_to_ptr.hbm [resolvable:$true] %s142_s13 }
  0x26   :  { %117 = dma.hbm_to_vmem [thread:$0]  %s113_s3, 16, %s115_s27, [#allocation13]  }
  0x27   :  { %s157_s21 = sshll.u32 %s2744_s19, 4  ;;  %s2193_s0 = smov [#allocation17]   ;;  %s158_s21 = int_to_ptr.hbm [resolvable:$true] %s157_s21 }
  0x28   :  { %s144_s10 = sshll.u32 %s2193_s0, 4  ;;  %s2194_s23 = smov [#allocation18]   ;;  %s145_s10 = int_to_ptr.vmem [resolvable:$true] %s144_s10 }
  0x29   :  { %147 = dma.hbm_to_vmem [thread:$0]  %s143_s13, 256, %s145_s10, [#allocation16]  }
  0x2a   :  { %s159_s2 = sshll.u32 %s2194_s23, 4  ;;  %s160_s2 = int_to_ptr.vmem [resolvable:$true] %s159_s2 }
  0x2b   :  { %162 = dma.hbm_to_vmem [thread:$0]  %s158_s21, 128, %s160_s2, [#allocation19]  }
  0x2c   :  { %2171 = dma.done.wait [#allocation5], 8192  }
  0x2d   :  { %2172 = vsyncadd [#allocation5], 4294959104 }
  0x2e   :  { %2173 = dma.done.wait [#allocation7], 96  }
  0x2f   :  { %2174 = vsyncadd [#allocation7], 4294967200 }
  0x30   :  { %2175 = dma.done.wait [#allocation10], 80  }
  0x31   :  { %2176 = vsyncadd [#allocation10], 4294967216 }
  0x32   :  { %2177 = dma.done.wait [#allocation13], 32  }
  0x33   :  { %2178 = vsyncadd [#allocation13], 4294967264 }
  0x34   :  { %2179 = dma.done.wait [#allocation16], 272  }
  0x35   :  { %2180 = vsyncadd [#allocation16], 4294967024 }
  0x36   :  { %2181 = dma.done.wait [#allocation19], 128  }
  0x37   :  { %2182 = vsyncadd [#allocation19], 4294967168  ;;  %s2756_s5 = sld [smem:[#allocation27_spill]]  ;;  %v203_v14 = vld [vmem:[#allocation4] sm:$0xff]  ;;  %v204_v15 = vld [vmem:[#allocation4 + $0x8] sm:$0xff]  ;;  %vm425_vm0 = vcmask 1041409  }
  0x38   :  { %v205_v16 = vld [vmem:[#allocation4 + $0x10] sm:$0xff]  ;;  %v267_v20 = vadd.f32 %v204_v15, %v203_v14  ;;  %v206_v21 = vld [vmem:[#allocation4 + $0x18] sm:$0xff]  ;;  %v211_v22 = vld [vmem:[#allocation4 + $0x40] sm:$0xff]  ;;  %vm427_vm1 = vcmask 1042434   ;;  %vm429_vm2 = vcmask 1043459   ;;  %vm431_vm3 = vcmask 1044484  }
  0x39   :  { %v212_v23 = vld [vmem:[#allocation4 + $0x48] sm:$0xff]  ;;  %v213_v26 = vld [vmem:[#allocation4 + $0x50] sm:$0xff]  ;;  %v207_v30 = vld [vmem:[#allocation4 + $0x20] sm:$0xff]  ;;  %vm433_vm4 = vcmask 1045509   ;;  %vm435_vm5 = vcmask 1046534   ;;  %vm437_vm6 = vcmask 1047559  }
  0x3a   :  { %v268_v27 = vadd.f32 %v267_v20, %v205_v16  ;;  %v280_v28 = vadd.f32 %v212_v23, %v211_v22  ;;  %v214_v31 = vld [vmem:[#allocation4 + $0x58] sm:$0xff]  ;;  %v219_v33 = vld [vmem:[#allocation4 + $0x80] sm:$0xff]  ;;  %v220_v34 = vld [vmem:[#allocation4 + $0x88] sm:$0xff]  ;;  %s2757_s3 = sld [smem:[#allocation29_spill]]  ;;  %s2195_s0 = smov 24   ;;  %vm626_vm10 = vcmask 64512  }
  0x3b   :  { %v221_v35 = vld [vmem:[#allocation4 + $0x90] sm:$0xff]  ;;  %v208_v39 = vld [vmem:[#allocation4 + $0x28] sm:$0xff]  ;;  %v215_v40 = vld [vmem:[#allocation4 + $0x60] sm:$0xff]  ;;  %v293_v41 = vadd.f32 %v220_v34, %v219_v33  ;;  %s2196_s4 = smov 104   ;;  %s2198_s29 = smov 112  }
  0x3c   :  { %v269_v36 = vadd.f32 %v268_v27, %v206_v21  ;;  %v281_v37 = vadd.f32 %v280_v28, %v213_v26  ;;  %v209_v44 = vld [vmem:[#allocation4 + $0x30] sm:$0xff]  ;;  %v222_v45 = vld [vmem:[#allocation4 + $0x98] sm:$0xff]  ;;  %v227_v46 = vld [vmem:[#allocation4 + $0xc0] sm:$0xff]  ;;  %s2199_s13 = smov 16   ;;  %s2202_s2 = smov 32  }
  0x3d   :  { %v409_v0 = vld [vmem:[%s2756_s5 + $0xf0] sm:$0xff]  ;;  %v410_v1 = vld [vmem:[%s2756_s5 + $0xf8] sm:$0xff]  ;;  %v407_v2 = vld [vmem:[%s2756_s5 + $0xe0] sm:$0xff]  ;;  %v294_v52 = vadd.f32 %v293_v41, %v221_v35 }
  0x3e   :  { %440 = vmatpush.msra.mxu0 %v409_v0  ;;  %460 = vmatpush.msra.mxu1 %v410_v1  ;;  %v408_v3 = vld [vmem:[%s2756_s5 + $0xe8] sm:$0xff]  ;;  %v405_v4 = vld [vmem:[%s2756_s5 + $0xd0] sm:$0xff]  ;;  %v406_v5 = vld [vmem:[%s2756_s5 + $0xd8] sm:$0xff]  ;;  %v270_v47 = vadd.f32 %v269_v36, %v207_v30  ;;  %v282_v48 = vadd.f32 %v281_v37, %v214_v31 }
  0x3f   :  { %v403_v6 = vld [vmem:[%s2756_s5 + $0xc0] sm:$0xff]  ;;  %v404_v7 = vld [vmem:[%s2756_s5 + $0xc8] sm:$0xff]  ;;  %v401_v8 = vld [vmem:[%s2756_s5 + $0xb0] sm:$0xff]  ;;  %v295_v0 = vadd.f32 %v294_v52, %v222_v45 }
  0x40   :  { %441 = vmatpush.msra.mxu0 %v407_v2  ;;  %461 = vmatpush.msra.mxu1 %v408_v3  ;;  %v402_v9 = vld [vmem:[%s2756_s5 + $0xb8] sm:$0xff]  ;;  %v399_v10 = vld [vmem:[%s2756_s5 + $0xa0] sm:$0xff]  ;;  %v400_v11 = vld [vmem:[%s2756_s5 + $0xa8] sm:$0xff]  ;;  %v271_v58 = vadd.f32 %v270_v47, %v208_v39  ;;  %v283_v59 = vadd.f32 %v282_v48, %v215_v40 }
  0x41   :  { %v397_v12 = vld [vmem:[%s2756_s5 + $0x90] sm:$0xff]  ;;  %v398_v13 = vld [vmem:[%s2756_s5 + $0x98] sm:$0xff]  ;;  %v395_v17 = vld [vmem:[%s2756_s5 + $0x80] sm:$0xff] }
  0x42   :  { %442 = vmatpush.msra.mxu0 %v405_v4  ;;  %462 = vmatpush.msra.mxu1 %v406_v5  ;;  %v396_v18 = vld [vmem:[%s2756_s5 + $0x88] sm:$0xff]  ;;  %v393_v19 = vld [vmem:[%s2756_s5 + $0x70] sm:$0xff]  ;;  %v394_v24 = vld [vmem:[%s2756_s5 + $0x78] sm:$0xff] }
  0x43   :  { %v391_v25 = vld [vmem:[%s2756_s5 + $0x60] sm:$0xff]  ;;  %v392_v29 = vld [vmem:[%s2756_s5 + $0x68] sm:$0xff]  ;;  %v389_v32 = vld [vmem:[%s2756_s5 + $0x50] sm:$0xff] }
  0x44   :  { %443 = vmatpush.msra.mxu0 %v403_v6  ;;  %463 = vmatpush.msra.mxu1 %v404_v7  ;;  %v390_v38 = vld [vmem:[%s2756_s5 + $0x58] sm:$0xff]  ;;  %v387_v42 = vld [vmem:[%s2756_s5 + $0x40] sm:$0xff]  ;;  %v388_v43 = vld [vmem:[%s2756_s5 + $0x48] sm:$0xff]  ;;  %v272_v6 = vadd.f32 %v271_v58, %v209_v44 }
  0x45   :  { %v216_v49 = vld [vmem:[#allocation4 + $0x68] sm:$0xff]  ;;  %v229_v51 = vld [vmem:[#allocation4 + $0xd0] sm:$0xff]  ;;  %v385_v53 = vld [vmem:[%s2756_s5 + $0x30] sm:$0xff] }
  0x46   :  { %444 = vmatpush.msra.mxu0 %v401_v8  ;;  %464 = vmatpush.msra.mxu1 %v402_v9  ;;  %v228_v50 = vld [vmem:[#allocation4 + $0xc8] sm:$0xff]  ;;  %v210_v55 = vld [vmem:[#allocation4 + $0x38] sm:$0xff]  ;;  %v217_v56 = vld [vmem:[#allocation4 + $0x70] sm:$0xff]  ;;  %v284_v7 = vadd.f32 %v283_v59, %v216_v49 }
  0x47   :  { %v386_v54 = vld [vmem:[%s2756_s5 + $0x38] sm:$0xff]  ;;  %v223_v57 = vld [vmem:[#allocation4 + $0xa0] sm:$0xff]  ;;  %v306_v60 = vadd.f32 %v228_v50, %v227_v46  ;;  %v230_v61 = vld [vmem:[#allocation4 + $0xd8] sm:$0xff] }
  0x48   :  { %445 = vmatpush.msra.mxu0 %v399_v10  ;;  %465 = vmatpush.msra.mxu1 %v400_v11  ;;  %v235_v62 = vld [vmem:[#allocation4 + $0x100] sm:$0xff]  ;;  %v236_v63 = vld [vmem:[#allocation4 + $0x108] sm:$0xff]  ;;  %v383_v1 = vld [vmem:[%s2756_s5 + $0x20] sm:$0xff] }
  0x49   :  { %v384_v2 = vld [vmem:[%s2756_s5 + $0x28] sm:$0xff]  ;;  %v224_v4 = vld [vmem:[#allocation4 + $0xa8] sm:$0xff]  ;;  %v237_v5 = vld [vmem:[#allocation4 + $0x110] sm:$0xff]  ;;  %v307_v8 = vadd.f32 %v306_v60, %v229_v51  ;;  %v319_v9 = vadd.f32 %v236_v63, %v235_v62 }
  0x4a   :  { %446 = vmatpush.msra.mxu0 %v397_v12  ;;  %466 = vmatpush.msra.mxu1 %v398_v13  ;;  %v218_v3 = vld [vmem:[#allocation4 + $0x78] sm:$0xff]  ;;  %v225_v10 = vld [vmem:[#allocation4 + $0xb0] sm:$0xff]  ;;  %v231_v11 = vld [vmem:[#allocation4 + $0xe0] sm:$0xff]  ;;  %v296_v13 = vadd.f32 %v295_v0, %v223_v57 }
  0x4b   :  { %v238_v12 = vld [vmem:[#allocation4 + $0x118] sm:$0xff]  ;;  %v381_v14 = vld [vmem:[%s2756_s5 + $0x10] sm:$0xff]  ;;  %v244_v16 = vld [vmem:[#allocation4 + $0x148] sm:$0xff]  ;;  %v308_v20 = vadd.f32 %v307_v8, %v230_v61  ;;  %v320_v21 = vadd.f32 %v319_v9, %v237_v5 }
  0x4c   :  { %447 = vmatpush.msra.mxu0 %v395_v17  ;;  %467 = vmatpush.msra.mxu1 %v396_v18  ;;  %v243_v15 = vld [vmem:[#allocation4 + $0x140] sm:$0xff]  ;;  %v245_v17 = vld [vmem:[#allocation4 + $0x150] sm:$0xff]  ;;  %v273_v18 = vadd.f32 %v272_v6, %v210_v55  ;;  %v382_v22 = vld [vmem:[%s2756_s5 + $0x18] sm:$0xff] }
  0x4d   :  { %v232_v23 = vld [vmem:[#allocation4 + $0xe8] sm:$0xff]  ;;  %v332_v26 = vadd.f32 %v244_v16, %v243_v15  ;;  %v379_v27 = vld [vmem:[%s2756_s5] sm:$0xff]  ;;  %v380_v28 = vld [vmem:[%s2756_s5 + $0x8] sm:$0xff]  ;;  %v309_v34 = vadd.f32 %v308_v20, %v231_v11  ;;  %v321_v35 = vadd.f32 %v320_v21, %v238_v12 }
  0x4e   :  { %448 = vmatpush.msra.mxu0 %v393_v19  ;;  %468 = vmatpush.msra.mxu1 %v394_v24  ;;  %v285_v19 = vadd.f32 %v284_v7, %v217_v56  ;;  %v239_v24 = vld [vmem:[#allocation4 + $0x120] sm:$0xff]  ;;  %v246_v30 = vld [vmem:[#allocation4 + $0x158] sm:$0xff]  ;;  %v233_v36 = vld [vmem:[#allocation4 + $0xf0] sm:$0xff] }
  0x4f   :  { %v251_v31 = vld [vmem:[#allocation4 + $0x180] sm:$0xff]  ;;  %v240_v37 = vld [vmem:[#allocation4 + $0x128] sm:$0xff]  ;;  %v333_v40 = vadd.f32 %v332_v26, %v245_v17  ;;  %v234_v41 = vld [vmem:[#allocation4 + $0xf8] sm:$0xff]  ;;  %v310_v46 = vadd.f32 %v309_v34, %v232_v23  ;;  %v322_v47 = vadd.f32 %v321_v35, %v239_v24 }
  0x50   :  { %449 = vmatpush.msra.mxu0 %v391_v25  ;;  %469 = vmatpush.msra.mxu1 %v392_v29  ;;  %v297_v25 = vadd.f32 %v296_v13, %v224_v4  ;;  %v226_v29 = vld [vmem:[#allocation4 + $0xb8] sm:$0xff]  ;;  %v286_v33 = vadd.f32 %v285_v19, %v218_v3  ;;  %v241_v48 = vld [vmem:[#allocation4 + $0x130] sm:$0xff]  ;;  %v259_v49 = vld [vmem:[#allocation4 + $0x1c0] sm:$0xff] }
  0x51   :  { %v260_v50 = vld [vmem:[#allocation4 + $0x1c8] sm:$0xff]  ;;  %v334_v52 = vadd.f32 %v333_v40, %v246_v30  ;;  %v254_v55 = vld [vmem:[#allocation4 + $0x198] sm:$0xff]  ;;  %v261_v56 = vld [vmem:[#allocation4 + $0x1d0] sm:$0xff]  ;;  %v311_v59 = vadd.f32 %v310_v46, %v233_v36  ;;  %v323_v60 = vadd.f32 %v322_v47, %v240_v37 }
  0x52   :  { %450 = vmatpush.msra.mxu0 %v389_v32  ;;  %470 = vmatpush.msra.mxu1 %v390_v38  ;;  %v274_v32 = vrot.slane %v273_v18, 4  ;;  %v252_v38 = vld [vmem:[#allocation4 + $0x188] sm:$0xff]  ;;  %v298_v39 = vadd.f32 %v297_v25, %v225_v10  ;;  %v287_v45 = vrot.slane %v286_v33, 4  ;;  %v242_v61 = vld [vmem:[#allocation4 + $0x138] sm:$0xff]  ;;  %v249_v62 = vld [vmem:[#allocation4 + $0x170] sm:$0xff] }
  0x53   :  { %v250_v3 = vld [vmem:[#allocation4 + $0x178] sm:$0xff]  ;;  %v255_v4 = vld [vmem:[#allocation4 + $0x1a0] sm:$0xff]  ;;  %v312_v8 = vadd.f32 %v311_v59, %v234_v41  ;;  %v324_v9 = vadd.f32 %v323_v60, %v241_v48  ;;  %v257_v24 = vld [vmem:[#allocation4 + $0x1b0] sm:$0xff] }
  0x54   :  { %451 = vmatpush.msra.mxu0 %v387_v42  ;;  %471 = vmatpush.msra.mxu1 %v388_v43  ;;  %v247_v42 = vld [vmem:[#allocation4 + $0x160] sm:$0xff]  ;;  %v253_v43 = vld [vmem:[#allocation4 + $0x190] sm:$0xff]  ;;  %v275_v44 = vadd.f32 %v274_v32, %v273_v18  ;;  %v299_v51 = vadd.f32 %v298_v39, %v226_v29  ;;  %v288_v58 = vadd.f32 %v287_v45, %v286_v33  ;;  %v262_v5 = vld [vmem:[#allocation4 + $0x1d8] sm:$0xff] }
  0x55   :  { %v335_v0 = vadd.f32 %v334_v52, %v247_v42  ;;  %v263_v15 = vld [vmem:[#allocation4 + $0x1e0] sm:$0xff]  ;;  %v313_v18 = vrot.slane %v312_v8, 4  ;;  %v325_v19 = vadd.f32 %v324_v9, %v242_v61  ;;  %v264_v25 = vld [vmem:[#allocation4 + $0x1e8] sm:$0xff]  ;;  %v258_v34 = vld [vmem:[#allocation4 + $0x1b8] sm:$0xff] }
  0x56   :  { %452 = vmatpush.msra.mxu0 %v385_v53  ;;  %472 = vmatpush.msra.mxu1 %v386_v54  ;;  %v345_v53 = vadd.f32 %v252_v38, %v251_v31  ;;  %v248_v54 = vld [vmem:[#allocation4 + $0x168] sm:$0xff]  ;;  %v276_v57 = vrot.slane %v275_v44, 2  ;;  %v300_v63 = vrot.slane %v299_v51, 4  ;;  %v289_v7 = vrot.slane %v288_v58, 2  ;;  %v265_v35 = vld [vmem:[#allocation4 + $0x1f0] sm:$0xff] }
  0x57   :  { %v336_v11 = vadd.f32 %v335_v0, %v248_v54  ;;  %v326_v29 = vrot.slane %v325_v19, 4 }
  0x58   :  { %453 = vmatpush.msra.mxu0 %v383_v1  ;;  %473 = vmatpush.msra.mxu1 %v384_v2  ;;  %v346_v1 = vadd.f32 %v345_v53, %v253_v43  ;;  %v358_v2 = vadd.f32 %v260_v50, %v259_v49  ;;  %v277_v6 = vadd.f32 %v276_v57, %v275_v44  ;;  %v266_v44 = vld [vmem:[#allocation4 + $0x1f8] sm:$0xff] }
  0x59   :  { %v301_v10 = vadd.f32 %v300_v63, %v299_v51  ;;  %v290_v17 = vadd.f32 %v289_v7, %v288_v58  ;;  %v337_v21 = vadd.f32 %v336_v11, %v249_v62  ;;  %v327_v38 = vadd.f32 %v326_v29, %v325_v19 }
  0x5a   :  { %454 = vmatpush.msra.mxu0 %v381_v14  ;;  %474 = vmatpush.msra.mxu1 %v382_v22  ;;  %v347_v12 = vadd.f32 %v346_v1, %v254_v55  ;;  %v359_v13 = vadd.f32 %v358_v2, %v261_v56  ;;  %v256_v14 = vld [vmem:[#allocation4 + $0x1a8] sm:$0xff]  ;;  %v278_v16 = vrot.slane %v277_v6, 1 }
  0x5b   :  { %v302_v20 = vrot.slane %v301_v10, 2  ;;  %v338_v31 = vadd.f32 %v337_v21, %v250_v3  ;;  %v328_v46 = vrot.slane %v327_v38, 2 }
  0x5c   :  { %455 = vmatpush.msra.mxu0 %v379_v27  ;;  %475 = vmatpush.msra.mxu1 %v380_v28  ;;  %v348_v22 = vadd.f32 %v347_v12, %v255_v4  ;;  %v360_v23 = vadd.f32 %v359_v13, %v262_v5  ;;  %v279_v26 = vadd.f32 %v278_v16, %v277_v6  ;;  %v291_v27 = vrot.slane %v290_v17, 1 }
  0x5d   :  { %v314_v28 = vadd.f32 %v313_v18, %v312_v8  ;;  %v303_v30 = vadd.f32 %v302_v20, %v301_v10  ;;  %v339_v41 = vrot.slane %v338_v31, 4  ;;  %v329_v53 = vadd.f32 %v328_v46, %v327_v38  ;;  %v559_v46 = vld [vmem:[%s2757_s3 + $0x70] sm:$0xff] }
  0x5e   :  { %v349_v32 = vadd.f32 %v348_v22, %v256_v14  ;;  %v361_v33 = vadd.f32 %v360_v23, %v263_v15  ;;  %v292_v36 = vadd.f32 %v291_v27, %v290_v17  ;;  %v371_v39 = vmul.f32 0.015625, %v279_v26  ;;  %v411_v23 = vld [vmem:[#allocation6] sm:$0x3] }
  0x5f   :  { %v315_v37 = vrot.slane %v314_v28, 2  ;;  %v304_v40 = vrot.slane %v303_v30, 1  ;;  %v340_v49 = vadd.f32 %v339_v41, %v338_v31  ;;  %v330_v60 = vrot.slane %v329_v53, 1 }
  0x60   :  { %v350_v42 = vadd.f32 %v349_v32, %v257_v24  ;;  %v362_v43 = vadd.f32 %v361_v33, %v264_v25  ;;  %v372_v47 = vmul.f32 0.015625, %v292_v36  ;;  %v413_v24 = vperm.slane %v411_v23, 0 }
  0x61   :  { %v316_v45 = vadd.f32 %v315_v37, %v314_v28  ;;  %v305_v48 = vadd.f32 %v304_v40, %v303_v30  ;;  %v341_v55 = vrot.slane %v340_v49, 2  ;;  %v331_v1 = vadd.f32 %v330_v60, %v329_v53  ;;  %v573_v53 = vld [vmem:[%s2757_s3 + $0xe0] sm:$0xff]  ;;  %v570_v60 = vld [vmem:[%s2757_s3 + $0xc8] sm:$0xff] }
  0x62   :  { %v351_v50 = vadd.f32 %v350_v42, %v258_v34  ;;  %v363_v51 = vadd.f32 %v362_v43, %v265_v35  ;;  %v426_v54 = vsel %vm425_vm0, %v372_v47, %v371_v39  ;;  %v414_v25 = vperm.slane %v411_v23, 1  ;;  %v575_v47 = vld [vmem:[%s2757_s3 + $0xf0] sm:$0xff] }
  0x63   :  { %v317_v52 = vrot.slane %v316_v45, 1  ;;  %v373_v58 = vmul.f32 0.015625, %v305_v48  ;;  %v342_v61 = vadd.f32 %v341_v55, %v340_v49  ;;  %v375_v6 = vmul.f32 0.015625, %v331_v1  ;;  %v2458_v48 = vld [vmem:[#allocation9] sm:$0xf] }
  0x64   :  { %v352_v56 = vrot.slane %v351_v50, 4  ;;  %v364_v57 = vadd.f32 %v363_v51, %v266_v44  ;;  %v560_v44 = vld [vmem:[%s2757_s3 + $0x78] sm:$0xff]  ;;  %v711_v49 = vperm.slane %v2458_v48, 1  ;;  %v574_v51 = vld [vmem:[%s2757_s3 + $0xe8] sm:$0xff]  ;;  %v551_v1 = vld [vmem:[%s2757_s3 + $0x30] sm:$0xff] }
  0x65   :  { %v318_v59 = vadd.f32 %v317_v52, %v316_v45  ;;  %v428_v0 = vsel %vm427_vm1, %v373_v58, %v426_v54  ;;  %v343_v3 = vrot.slane %v342_v61, 1  ;;  %v576_v45 = vld [vmem:[%s2757_s3 + $0xf8] sm:$0xff]  ;;  %v557_v52 = vld [vmem:[%s2757_s3 + $0x60] sm:$0xff]  ;;  %v901_v58 = vperm.slane %v2458_v48, 3 }
  0x66   :  { %v353_v62 = vadd.f32 %v352_v56, %v351_v50  ;;  %v365_v63 = vrot.slane %v364_v57, 4  ;;  %v558_v50 = vld [vmem:[%s2757_s3 + $0x68] sm:$0xff]  ;;  %713 = vrot.lane.b32.xlu2 %v711_v49, %s2189_s1  ;;  %v556_v54 = vld [vmem:[%s2757_s3 + $0x58] sm:$0xff]  ;;  %v555_v56 = vld [vmem:[%s2757_s3 + $0x50] sm:$0xff] }
  0x67   :  { %v374_v2 = vmul.f32 0.015625, %v318_v59  ;;  %v344_v8 = vadd.f32 %v343_v3, %v342_v61  ;;  %v572_v55 = vld [vmem:[%s2757_s3 + $0xd8] sm:$0xff]  ;;  %v554_v59 = vld [vmem:[%s2757_s3 + $0x48] sm:$0xff]  ;;  %v553_v61 = vld [vmem:[%s2757_s3 + $0x40] sm:$0xff] }
  0x68   :  { %v354_v4 = vrot.slane %v353_v62, 2  ;;  %v366_v5 = vadd.f32 %v365_v63, %v364_v57  ;;  %v571_v57 = vld [vmem:[%s2757_s3 + $0xd0] sm:$0xff]  ;;  %v552_v63 = vld [vmem:[%s2757_s3 + $0x38] sm:$0xff]  ;;  %v550_v3 = vld [vmem:[%s2757_s3 + $0x28] sm:$0xff] }
  0x69   :  { %v430_v7 = vsel %vm429_vm2, %v374_v2, %v428_v0  ;;  %v376_v13 = vmul.f32 0.015625, %v344_v8  ;;  %v568_v0 = vld [vmem:[%s2757_s3 + $0xb8] sm:$0xff]  ;;  %v567_v2 = vld [vmem:[%s2757_s3 + $0xb0] sm:$0xff] }
  0x6a   :  { %v355_v9 = vadd.f32 %v354_v4, %v353_v62  ;;  %v367_v10 = vrot.slane %v366_v5, 2  ;;  %v432_v14 = vsel %vm431_vm3, %v375_v6, %v430_v7  ;;  %v569_v62 = vld [vmem:[%s2757_s3 + $0xc0] sm:$0xff]  ;;  %v566_v4 = vld [vmem:[%s2757_s3 + $0xa8] sm:$0xff]  ;;  %v548_v7 = vld [vmem:[%s2757_s3 + $0x18] sm:$0xff] }
  0x6b   :  { %v434_v17 = vsel %vm433_vm4, %v376_v13, %v432_v14  ;;  %v565_v6 = vld [vmem:[%s2757_s3 + $0xa0] sm:$0xff]  ;;  %v564_v8 = vld [vmem:[%s2757_s3 + $0x98] sm:$0xff]  ;;  %v542_v14 = vld [vmem:[#allocation17 + $0x8] sm:$0xff] }
  0x6c   :  { %v356_v11 = vrot.slane %v355_v9, 1  ;;  %v368_v12 = vadd.f32 %v367_v10, %v366_v5  ;;  %v549_v5 = vld [vmem:[%s2757_s3 + $0x20] sm:$0xff]  ;;  %v563_v10 = vld [vmem:[%s2757_s3 + $0x90] sm:$0xff] }
  0x6d   :  { %v541_v13 = vld [vmem:[#allocation17] sm:$0xff] }
  0x6e   :  { %v357_v15 = vadd.f32 %v356_v11, %v355_v9  ;;  %v369_v16 = vrot.slane %v368_v12, 1  ;;  %903 = vrot.lane.b32.xlu2 %v901_v58, %s2195_s0  ;;  %v547_v9 = vld [vmem:[%s2757_s3 + $0x10] sm:$0xff]  ;;  %v546_v11 = vld [vmem:[%s2757_s3 + $0x8] sm:$0xff] }
  0x70   :  { %v370_v18 = vadd.f32 %v369_v16, %v368_v12  ;;  %v377_v19 = vmul.f32 0.015625, %v357_v15  ;;  %v562_v12 = vld [vmem:[%s2757_s3 + $0x88] sm:$0xff]  ;;  %v545_v15 = vld [vmem:[%s2757_s3] sm:$0xff] }
  0x71   :  { %v561_v16 = vld [vmem:[%s2757_s3 + $0x80] sm:$0xff]  ;;  %s2197_s3 = smov 120  }
  0x72   :  { %v378_v20 = vmul.f32 0.015625, %v370_v18  ;;  %v436_v21 = vsel %vm435_vm5, %v377_v19, %v434_v17 }
  0x74   :  { %v438_v22 = vsel %vm437_vm6, %v378_v20, %v436_v21 }
  0x75   :  { %456 = vmatmul.f32.vlgmr.msra.gmra.mxu0 %v438_v22  ;;  %476 = vmatmul.f32.vlgmr.msra.gmra.mxu1 %v438_v22 }
  0xf2   :  { %v457_v26 = vpop.f32.mrf.mxu0  ;;  %v477_v27 = vpop.f32.mrf.mxu1 }
  0xf3   :  { %v2436_v28 = vadd.f32 %v457_v26, %v413_v24  ;;  %v2438_v29 = vadd.f32 %v477_v27, %v414_v25  ;;  %v714_v25 = vpop.permute.xlu2 %713  ;;  %v577_v27 = vld [vmem:[#allocation8] sm:$0xf] }
  0xf5   :  { %v480_v30 = vmul.f32 %v2436_v28, %v2436_v28  ;;  %v481_v31 = vmul.f32 %v2438_v29, %v2438_v29  ;;  %v543_v17 = vmul.f32 %v541_v13, %v2436_v28  ;;  %v544_v18 = vmul.f32 %v542_v14, %v2438_v29 }
  0xf7   :  { %v482_v32 = vadd.f32 %v481_v31, %v480_v30  ;;  %v624_v31 = vperm.slane %v2458_v48, 0 }
  0xf9   :  { %483 = vadd.xlane.f32.xlu0 %v482_v32 }
 0x16c   :  { %v484_v33 = vpop.xlane.xlu0 %483 }
 0x16d   :  { %v485_v34 = vadd.f32 1e-12, %v484_v33 }
 0x16f   :  { %1843 = vrsqrt.f32 %v485_v34  ;;  %vm492_vm8 = vweird.f32 %v485_v34 }
 0x175   :  { %v1844_v35 = vpop.eup %1843 }
 0x176   :  { %v487_v36 = vmul.f32 %v1844_v35, %v485_v34  ;;  %vm493_vm7 = vweird.f32 %v1844_v35 }
 0x177   :  { %vm494_vm9 = vmor %vm492_vm8, %vm493_vm7 }
 0x178   :  { %v488_v37 = vmul.f32 %v1844_v35, %v487_v36  ;;  %v724_v36 = vrot.slane %v577_v27, 1 }
 0x17a   :  { %v489_v38 = vmul.f32 0.5, %v488_v37 }
 0x17c   :  { %v490_v39 = vsub.f32 1.5, %v489_v38 }
 0x17e   :  { %v491_v40 = vmul.f32 %v1844_v35, %v490_v39  ;;  %v819_v39 = vrot.slane %v577_v27, 2 }
 0x180   :  { %v495_v41 = vsel %vm494_vm9, %v1844_v35, %v491_v40  ;;  %v914_v40 = vrot.slane %v577_v27, 3 }
 0x181   :  { %v496_v42 = vmul.f32 %v495_v41, %v2436_v28  ;;  %v497_v43 = vmul.f32 %v495_v41, %v2438_v29  ;;  %v806_v28 = vperm.slane %v2458_v48, 2  ;;  %v904_v29 = vpop.permute.xlu2 %903 }
 0x183   :  { %513 = vmatpush.xpose.msra.mxu2 %v496_v42  ;;  %533 = vmatpush.xpose.msra.mxu3 %v497_v43 }
 0x186   :  { %514 = vmatmul.f32.vlgmr.msra.gmra.mxu2 %v496_v42  ;;  %534 = vmatmul.f32.vlgmr.msra.gmra.mxu3 %v497_v43 }
 0x187   :  { %584 = vmatpush.msrb.mxu2 %v560_v44  ;;  %604 = vmatpush.msrb.mxu3 %v576_v45 }
 0x189   :  { %585 = vmatpush.msrb.mxu2 %v559_v46  ;;  %605 = vmatpush.msrb.mxu3 %v575_v47 }
 0x18b   :  { %586 = vmatpush.msrb.mxu2 %v558_v50  ;;  %606 = vmatpush.msrb.mxu3 %v574_v51  ;;  %v2200_v50 = vmov 0.0  }
 0x18d   :  { %587 = vmatpush.msrb.mxu2 %v557_v52  ;;  %607 = vmatpush.msrb.mxu3 %v573_v53 }
 0x18f   :  { %588 = vmatpush.msrb.mxu2 %v556_v54  ;;  %608 = vmatpush.msrb.mxu3 %v572_v55 }
 0x191   :  { %589 = vmatpush.msrb.mxu2 %v555_v56  ;;  %609 = vmatpush.msrb.mxu3 %v571_v57 }
 0x193   :  { %590 = vmatpush.msrb.mxu2 %v554_v59  ;;  %610 = vmatpush.msrb.mxu3 %v570_v60 }
 0x195   :  { %591 = vmatpush.msrb.mxu2 %v553_v61  ;;  %611 = vmatpush.msrb.mxu3 %v569_v62 }
 0x197   :  { %592 = vmatpush.msrb.mxu2 %v552_v63  ;;  %612 = vmatpush.msrb.mxu3 %v568_v0 }
 0x199   :  { %593 = vmatpush.msrb.mxu2 %v551_v1  ;;  %613 = vmatpush.msrb.mxu3 %v567_v2 }
 0x19b   :  { %594 = vmatpush.msrb.mxu2 %v550_v3  ;;  %614 = vmatpush.msrb.mxu3 %v566_v4 }
 0x19d   :  { %595 = vmatpush.msrb.mxu2 %v549_v5  ;;  %615 = vmatpush.msrb.mxu3 %v565_v6 }
 0x19f   :  { %596 = vmatpush.msrb.mxu2 %v548_v7  ;;  %616 = vmatpush.msrb.mxu3 %v564_v8 }
 0x1a1   :  { %597 = vmatpush.msrb.mxu2 %v547_v9  ;;  %617 = vmatpush.msrb.mxu3 %v563_v10 }
 0x1a3   :  { %598 = vmatpush.msrb.mxu2 %v546_v11  ;;  %618 = vmatpush.msrb.mxu3 %v562_v12 }
 0x1a5   :  { %599 = vmatpush.msrb.mxu2 %v545_v15  ;;  %619 = vmatpush.msrb.mxu3 %v561_v16 }
 0x1a6   :  { %600 = vmatmul.f32.vlgmr.msrb.gmra.mxu2 %v543_v17  ;;  %620 = vmatmul.f32.vlgmr.msrb.gmra.mxu3 %v544_v18 }
 0x209   :  { %v515_v19 = vpop.f32.mrf.mxu2  ;;  %v535_v20 = vpop.f32.mrf.mxu3 }
 0x20a   :  { %v536_v21 = vadd.f32 %v535_v20, %v515_v19 }
 0x20c   :  { %vm538_vm11 = vcmp.gt.f32.partialorder %v536_v21, 0.2 }
 0x20d   :  { %v2567_v51 = vsel %vm538_vm11, 1.0, %v2200_v50 }
 0x20e   :  { %vm661_vm13 = vcmp.gt.f32.partialorder %v2567_v51, 0.0 }
 0x229   :  { %v601_v22 = vpop.f32.mrf.mxu2  ;;  %v621_v23 = vpop.f32.mrf.mxu3 }
 0x22a   :  { %v622_v24 = vadd.f32 %v621_v23, %v601_v22 }
 0x22c   :  { %915 = vrot.lane.b32.xlu1 %v622_v24, %s2196_s4  ;;  %725 = vrot.lane.b32.xlu0 %v622_v24, %s2197_s3  ;;  %v716_v26 = vmul.f32 %v714_v25, %v622_v24  ;;  %v906_v30 = vmul.f32 %v904_v29, %v622_v24  ;;  %v625_v32 = vmul.f32 %v624_v31, %v622_v24 }
 0x22d   :  { %1784 = vmatpush.xpose.msk.msrb.mxu0 %vm626_vm10, %v622_v24  ;;  %706 = vmatpush.msrb.mxu1 %v622_v24 }
 0x22e   :  { %718 = vrot.lane.b32.xlu2 %v716_v26, %s2197_s3  ;;  %v627_v33 = vsel %vm626_vm10, %v625_v32, 0.0 }
 0x230   :  { %1785 = vmatmul.msk.f32.vlgmr.msrb.gmra.mxu0 %vm626_vm10, %v577_v27 }
 0x234   :  { %820 = vrot.lane.b32.xlu1 %v622_v24, %s2198_s29 }
 0x23c   :  { %808 = vrot.lane.b32.xlu1 %v806_v28, %s2199_s13 }
 0x244   :  { %908 = vrot.lane.b32.xlu1 %v906_v30, %s2196_s4 }
 0x26e   :  { %628 = vadd.xlane.f32.xlu1 %v627_v33 }
 0x288   :  { %v719_v34 = vpop.permute.xlu2 %718 }
 0x289   :  { %v721_v35 = vsel %vm626_vm10, %v719_v34, 0.0 }
 0x28a   :  { %722 = vadd.xlane.f32.xlu0 %v721_v35 }
 0x29e   :  { %v916_v37 = vpop.permute.xlu1 %915  ;;  %v726_v38 = vpop.permute.xlu0 %725 }
 0x29f   :  { %1787 = vmatpush.xpose.msk.msra.mxu2 %vm626_vm10, %v726_v38  ;;  %801 = vmatpush.msra.mxu3 %v726_v38 }
 0x2a1   :  { %991 = vmatpush.msrb.mxu3 %v916_v37 }
 0x2a2   :  { %1788 = vmatmul.msk.f32.vlgmr.msra.gmra.mxu2 %vm626_vm10, %v724_v36 }
 0x2a3   :  { %1793 = vmatpush.xpose.msk.msrb.mxu2 %vm626_vm10, %v916_v37 }
 0x2a6   :  { %v821_v41 = vpop.permute.xlu1 %820 }
 0x2a7   :  { %1790 = vmatpush.xpose.msk.msra.mxu0 %vm626_vm10, %v821_v41  ;;  %896 = vmatpush.msra.mxu1 %v821_v41 }
 0x2aa   :  { %1794 = vmatmul.msk.f32.vlgmr.msrb.gmra.mxu2 %vm626_vm10, %v914_v40  ;;  %1791 = vmatmul.msk.f32.vlgmr.msra.gmra.mxu0 %vm626_vm10, %v819_v39 }
 0x2ad   :  { %v653_v46 = vpop.f32.mrf.mxu0 }
 0x2ae   :  { %v809_v42 = vpop.permute.xlu1 %808  ;;  %v656_v47 = vperm.slane %v653_v46, 0 }
 0x2af   :  { %v811_v43 = vmul.f32 %v809_v42, %v622_v24 }
 0x2b1   :  { %813 = vrot.lane.b32.xlu2 %v811_v43, %s2198_s29  ;;  %v580_v43 = vld [vmem:[%s2742_s17] sm:$0xff] }
 0x2b6   :  { %v909_v44 = vpop.permute.xlu1 %908 }
 0x2b7   :  { %v911_v45 = vsel %vm626_vm10, %v909_v44, 0.0 }
 0x2da   :  { %912 = vadd.xlane.f32.xlu2 %v911_v45 }
 0x2e1   :  { %v629_v48 = vpop.xlane.xlu1 %628 }
 0x2e2   :  { %v657_v49 = vadd.f32 %v656_v47, %v629_v48 }
 0x2e4   :  { %v659_v52 = vmul.f32 0.2, %v657_v49  ;;  %vm658_vm12 = vcmp.gt.f32.partialorder %v657_v49, 0.0 }
 0x2e6   :  { %v660_v53 = vsel %vm658_vm12, %v657_v49, %v659_v52 }
 0x2e7   :  { %v662_v54 = vsel %vm661_vm13, %v660_v53, -1e+09 }
 0x2e8   :  { %v663_v55 = vsel %vm626_vm10, %v662_v54, -inf }
 0x2e9   :  { %664 = vmax.xlane.f32.xlu1 %v663_v55 }
 0x2fd   :  { %v723_v60 = vpop.xlane.xlu0 %722 }
 0x30b   :  { %v814_v56 = vpop.permute.xlu2 %813 }
 0x30c   :  { %v816_v57 = vsel %vm626_vm10, %v814_v56, 0.0 }
 0x30d   :  { %817 = vadd.xlane.f32.xlu0 %v816_v57 }
 0x325   :  { %v748_v58 = vpop.f32.mrf.mxu2 }
 0x326   :  { %v751_v59 = vperm.slane %v748_v58, 0 }
 0x327   :  { %v843_v15 = vpop.f32.mrf.mxu0 }
 0x328   :  { %v752_v61 = vadd.f32 %v751_v59, %v723_v60  ;;  %v846_v16 = vperm.slane %v843_v15, 0  ;;  %v583_v15 = vld [vmem:[%s2742_s17 + $0x18] sm:$0xff] }
 0x32a   :  { %vm753_vm14 = vcmp.gt.f32.partialorder %v752_v61, 0.0  ;;  %v754_v62 = vmul.f32 0.2, %v752_v61 }
 0x32c   :  { %v755_v63 = vsel %vm753_vm14, %v752_v61, %v754_v62 }
 0x32d   :  { %v756_v0 = vsel %vm661_vm13, %v755_v63, -1e+09  ;;  %v938_v2 = vpop.f32.mrf.mxu2 }
 0x32e   :  { %v757_v1 = vsel %vm626_vm10, %v756_v0, -inf  ;;  %v941_v3 = vperm.slane %v938_v2, 0 }
 0x32f   :  { %758 = vmax.xlane.f32.xlu2 %v757_v1  ;;  %v581_v1 = vld [vmem:[%s2742_s17 + $0x8] sm:$0xff] }
 0x34d   :  { %v913_v4 = vpop.xlane.xlu2 %912 }
 0x34e   :  { %v942_v5 = vadd.f32 %v941_v3, %v913_v4 }
 0x350   :  { %v944_v6 = vmul.f32 0.2, %v942_v5  ;;  %vm943_vm15 = vcmp.gt.f32.partialorder %v942_v5, 0.0 }
 0x352   :  { %v945_v7 = vsel %vm943_vm15, %v942_v5, %v944_v6 }
 0x353   :  { %v946_v8 = vsel %vm661_vm13, %v945_v7, -1e+09 }
 0x354   :  { %v947_v9 = vsel %vm626_vm10, %v946_v8, -inf }
 0x355   :  { %948 = vmax.xlane.f32.xlu0 %v947_v9 }
 0x35c   :  { %v665_v10 = vpop.xlane.xlu1 %664 }
 0x35d   :  { %v666_v11 = vsub.f32 %v662_v54, %v665_v10 }
 0x35f   :  { %v667_v12 = vmul.f32 1.442695, %v666_v11 }
 0x361   :  { %1845 = vpow2.f32 %v667_v12 }
 0x367   :  { %v1846_v13 = vpop.eup %1845 }
 0x368   :  { %v669_v14 = vsel %vm626_vm10, %v1846_v13, 0.0 }
 0x369   :  { %670 = vadd.xlane.f32.xlu0 %v669_v14 }
 0x380   :  { %v818_v17 = vpop.xlane.xlu0 %817 }
 0x381   :  { %v847_v18 = vadd.f32 %v846_v16, %v818_v17 }
 0x383   :  { %v849_v19 = vmul.f32 0.2, %v847_v18  ;;  %vm848_vm0 = vcmp.gt.f32.partialorder %v847_v18, 0.0 }
 0x385   :  { %v850_v20 = vsel %vm848_vm0, %v847_v18, %v849_v19 }
 0x386   :  { %v851_v21 = vsel %vm661_vm13, %v850_v20, -1e+09 }
 0x387   :  { %v852_v22 = vsel %vm626_vm10, %v851_v21, -inf }
 0x388   :  { %853 = vmax.xlane.f32.xlu2 %v852_v22 }
 0x3a2   :  { %v759_v23 = vpop.xlane.xlu2 %758 }
 0x3a3   :  { %v760_v24 = vsub.f32 %v756_v0, %v759_v23 }
 0x3a5   :  { %v761_v25 = vmul.f32 1.442695, %v760_v24 }
 0x3a7   :  { %1847 = vpow2.f32 %v761_v25 }
 0x3ad   :  { %v1848_v26 = vpop.eup %1847 }
 0x3ae   :  { %v763_v27 = vsel %vm626_vm10, %v1848_v26, 0.0 }
 0x3af   :  { %764 = vadd.xlane.f32.xlu1 %v763_v27 }
 0x3c8   :  { %v949_v28 = vpop.xlane.xlu0 %948 }
 0x3c9   :  { %v950_v29 = vsub.f32 %v946_v8, %v949_v28 }
 0x3cb   :  { %v951_v30 = vmul.f32 1.442695, %v950_v29  ;;  %v582_v29 = vld [vmem:[%s2742_s17 + $0x10] sm:$0xff] }
 0x3cd   :  { %1849 = vpow2.f32 %v951_v30 }
 0x3d3   :  { %v2585_v31 = vpop.eup %1849 }
 0x3d4   :  { %v953_v32 = vsel %vm626_vm10, %v2585_v31, 0.0 }
 0x3d5   :  { %954 = vadd.xlane.f32.xlu2 %v953_v32 }
 0x3dc   :  { %v671_v33 = vpop.xlane.xlu0 %670 }
 0x3dd   :  { %1851 = vrcp.f32 %v671_v33  ;;  %v683_v37 = vand.u32 2147483648, %v671_v33  ;;  %v681_v39 = vand.u32 2147483647, %v671_v33  ;;  %vm677_vm2 = vweird.f32 %v671_v33 }
 0x3df   :  { %v684_v41 = vor.u32 1.1754944e-38, %v683_v37  ;;  %vm682_vm4 = vcmp.eq.f32.partialorder %v681_v39, 8.507059e+37  ;;  %v1027_v37 = vld [vmem:[%s2732_s7 + $0x10] sm:$0xff]  ;;  %v1025_v39 = vld [vmem:[%s2732_s7] sm:$0xff] }
 0x3e3   :  { %v1852_v34 = vpop.eup %1851 }
 0x3e4   :  { %v673_v35 = vmul.f32 %v1852_v34, %v671_v33  ;;  %vm678_vm1 = vweird.f32 %v1852_v34 }
 0x3e5   :  { %vm679_vm3 = vmor %vm677_vm2, %vm678_vm1 }
 0x3e6   :  { %v674_v36 = vsub.f32 1.0, %v673_v35 }
 0x3e8   :  { %v675_v38 = vmul.f32 %v1852_v34, %v674_v36  ;;  %v1028_v36 = vld [vmem:[%s2732_s7 + $0x18] sm:$0xff] }
 0x3e9   :  { %1049 = vmatpush.msrb.mxu0 %v1028_v36 }
 0x3ea   :  { %v676_v40 = vadd.f32 %v1852_v34, %v675_v38  ;;  %v1026_v38 = vld [vmem:[%s2732_s7 + $0x8] sm:$0xff] }
 0x3eb   :  { %1050 = vmatpush.msrb.mxu0 %v1027_v37 }
 0x3ec   :  { %v680_v42 = vsel %vm679_vm3, %v1852_v34, %v676_v40  ;;  %vm1009_vm3 = vcmask 130048  }
 0x3ed   :  { %v685_v44 = vsel %vm682_vm4, %v684_v41, %v680_v42  ;;  %1051 = vmatpush.msrb.mxu0 %v1026_v38  ;;  %vm1011_vm4 = vcmask 195584   ;;  %v1838_v41 = vld [vmem:[%s2731_s6] ss:$0 sm:$0xff] }
 0x3ee   :  { %v686_v45 = vmul.f32 %v1846_v13, %v685_v44 }
 0x3ef   :  { %1052 = vmatpush.msrb.mxu0 %v1025_v39 }
 0x3f0   :  { %v687_v46 = vmul.f32 %v686_v45, %v580_v43 }
 0x3f2   :  { %1786 = vmatmul.msk.f32.vlgmr.msrb.gmra.mxu1 %vm626_vm10, %v687_v46 }
 0x3fb   :  { %v854_v47 = vpop.xlane.xlu2 %853 }
 0x3fc   :  { %v855_v48 = vsub.f32 %v851_v21, %v854_v47 }
 0x3fe   :  { %v856_v49 = vmul.f32 1.442695, %v855_v48 }
 0x400   :  { %1853 = vpow2.f32 %v856_v49 }
 0x406   :  { %v1854_v52 = vpop.eup %1853 }
 0x407   :  { %v858_v53 = vsel %vm626_vm10, %v1854_v52, 0.0 }
 0x408   :  { %859 = vadd.xlane.f32.xlu1 %v858_v53  ;;  %v1023_v53 = vld [vmem:[%s2743_s18] sm:$0xff] }
 0x422   :  { %v765_v54 = vpop.xlane.xlu1 %764 }
 0x423   :  { %1855 = vrcp.f32 %v765_v54  ;;  %v777_v58 = vand.u32 2147483648, %v765_v54  ;;  %v775_v60 = vand.u32 2147483647, %v765_v54  ;;  %vm771_vm6 = vweird.f32 %v765_v54 }
 0x425   :  { %v778_v62 = vor.u32 1.1754944e-38, %v777_v58  ;;  %vm776_vm8 = vcmp.eq.f32.partialorder %v775_v60, 8.507059e+37 }
 0x429   :  { %v1856_v55 = vpop.eup %1855 }
 0x42a   :  { %v767_v56 = vmul.f32 %v1856_v55, %v765_v54  ;;  %vm772_vm5 = vweird.f32 %v1856_v55 }
 0x42b   :  { %vm773_vm7 = vmor %vm771_vm6, %vm772_vm5  ;;  %vm1033_vm6 = vcmask 261120  }
 0x42c   :  { %v768_v57 = vsub.f32 1.0, %v767_v56 }
 0x42e   :  { %v769_v59 = vmul.f32 %v1856_v55, %v768_v57  ;;  %v1839_v57 = vld [vmem:[#allocation12] ss:$0 sm:$0xff] }
 0x430   :  { %v770_v61 = vadd.f32 %v1856_v55, %v769_v59  ;;  %v1029_v59 = vld [vmem:[#allocation11] sm:$0x1] }
 0x432   :  { %v774_v63 = vsel %vm773_vm7, %v1856_v55, %v770_v61 }
 0x433   :  { %v779_v0 = vsel %vm776_vm8, %v778_v62, %v774_v63 }
 0x434   :  { %v780_v2 = vmul.f32 %v1848_v26, %v779_v0 }
 0x436   :  { %v781_v3 = vmul.f32 %v780_v2, %v581_v1 }
 0x438   :  { %1789 = vmatmul.msk.f32.vlgmr.msra.gmra.mxu3 %vm626_vm10, %v781_v3 }
 0x448   :  { %v955_v4 = vpop.xlane.xlu2 %954 }
 0x449   :  { %1857 = vrcp.f32 %v955_v4  ;;  %v967_v8 = vand.u32 2147483648, %v955_v4  ;;  %v965_v10 = vand.u32 2147483647, %v955_v4  ;;  %vm961_vm11 = vweird.f32 %v955_v4 }
 0x44b   :  { %v968_v12 = vor.u32 1.1754944e-38, %v967_v8  ;;  %vm966_vm14 = vcmp.eq.f32.partialorder %v965_v10, 8.507059e+37 }
 0x44f   :  { %v1858_v5 = vpop.eup %1857 }
 0x450   :  { %v957_v6 = vmul.f32 %v1858_v5, %v955_v4  ;;  %vm962_vm9 = vweird.f32 %v1858_v5 }
 0x451   :  { %vm963_vm12 = vmor %vm961_vm11, %vm962_vm9 }
 0x452   :  { %v958_v7 = vsub.f32 1.0, %v957_v6 }
 0x454   :  { %v959_v9 = vmul.f32 %v1858_v5, %v958_v7 }
 0x456   :  { %v960_v11 = vadd.f32 %v1858_v5, %v959_v9 }
 0x458   :  { %v964_v13 = vsel %vm963_vm12, %v1858_v5, %v960_v11 }
 0x459   :  { %v969_v14 = vsel %vm966_vm14, %v968_v12, %v964_v13 }
 0x45a   :  { %v970_v16 = vmul.f32 %v2585_v31, %v969_v14 }
 0x45c   :  { %v971_v17 = vmul.f32 %v970_v16, %v583_v15 }
 0x45e   :  { %1795 = vmatmul.msk.f32.vlgmr.msrb.gmra.mxu3 %vm626_vm10, %v971_v17 }
 0x46f   :  { %v708_v34 = vpop.f32.mrf.mxu1 }
 0x47b   :  { %v860_v18 = vpop.xlane.xlu1 %859 }
 0x47c   :  { %1859 = vrcp.f32 %v860_v18  ;;  %v872_v22 = vand.u32 2147483648, %v860_v18  ;;  %v870_v24 = vand.u32 2147483647, %v860_v18  ;;  %vm866_vm0 = vweird.f32 %v860_v18 }
 0x47e   :  { %v873_v26 = vor.u32 1.1754944e-38, %v872_v22  ;;  %vm871_vm2 = vcmp.eq.f32.partialorder %v870_v24, 8.507059e+37  ;;  %v1148_v24 = vld [vmem:[%s2736_s11 + $0x8] sm:$0xff] }
 0x47f   :  { %1170 = vmatpush.msra.mxu3 %v1148_v24 }
 0x482   :  { %v1860_v19 = vpop.eup %1859 }
 0x483   :  { %v862_v20 = vmul.f32 %v1860_v19, %v860_v18  ;;  %vm867_vm15 = vweird.f32 %v1860_v19 }
 0x484   :  { %vm868_vm1 = vmor %vm866_vm0, %vm867_vm15  ;;  %vm1247_vm0 = vcmask 253952  }
 0x485   :  { %v863_v21 = vsub.f32 1.0, %v862_v20 }
 0x487   :  { %v864_v23 = vmul.f32 %v1860_v19, %v863_v21  ;;  %v1032_v21 = vld [vmem:[#allocation18] sm:$0xff] }
 0x489   :  { %v865_v25 = vadd.f32 %v1860_v19, %v864_v23 }
 0x48b   :  { %v869_v27 = vsel %vm868_vm1, %v1860_v19, %v865_v25  ;;  %v1147_v25 = vld [vmem:[%s2736_s11] sm:$0xff] }
 0x48c   :  { %v874_v28 = vsel %vm871_vm2, %v873_v26, %v869_v27  ;;  %1171 = vmatpush.msra.mxu3 %v1147_v25  ;;  %v1181_v26 = vld [vmem:[%s2737_s12 + $0x18] sm:$0xff]  ;;  %v1180_v27 = vld [vmem:[%s2737_s12 + $0x10] sm:$0xff] }
 0x48d   :  { %v875_v30 = vmul.f32 %v1854_v52, %v874_v28  ;;  %1197 = vmatpush.msra.mxu0 %v1181_v26  ;;  %v1179_v28 = vld [vmem:[%s2737_s12 + $0x8] sm:$0xff] }
 0x48e   :  { %1408 = vmatpush.msrb.mxu3 %v1181_v26 }
 0x48f   :  { %v876_v31 = vmul.f32 %v875_v30, %v582_v29  ;;  %1198 = vmatpush.msra.mxu0 %v1180_v27  ;;  %v1178_v29 = vld [vmem:[%s2737_s12] sm:$0xff]  ;;  %v1840_v30 = vld [vmem:[#allocation14] ss:$0 sm:$0xff]  ;;  %s2201_s12 = smov 64  }
 0x490   :  { %1409 = vmatpush.msrb.mxu3 %v1180_v27 }
 0x491   :  { %1792 = vmatmul.msk.f32.vlgmr.msra.gmra.mxu1 %vm626_vm10, %v876_v31  ;;  %1199 = vmatpush.msra.mxu0 %v1179_v28 }
 0x492   :  { %1410 = vmatpush.msrb.mxu3 %v1179_v28 }
 0x493   :  { %1200 = vmatpush.msra.mxu0 %v1178_v29 }
 0x494   :  { %1411 = vmatpush.msrb.mxu3 %v1178_v29 }
 0x4bb   :  { %v803_v32 = vpop.f32.mrf.mxu3 }
 0x4bc   :  { %997 = vrot.lane.b32.xlu0 %v803_v32, %s2189_s1 }
 0x4e1   :  { %v993_v33 = vpop.f32.mrf.mxu3 }
 0x4e2   :  { %1005 = vrot.lane.b32.xlu1 %v993_v33, %s2195_s0 }
 0x50e   :  { %v898_v35 = vpop.f32.mrf.mxu1 }
 0x50f   :  { %1001 = vrot.lane.b32.xlu2 %v898_v35, %s2199_s13 }
 0x52e   :  { %v998_v40 = vpop.permute.xlu0 %997 }
 0x52f   :  { %v1008_v42 = vsel %vm626_vm10, %v708_v34, %v998_v40 }
 0x554   :  { %v1006_v44 = vpop.permute.xlu1 %1005 }
 0x569   :  { %v1002_v43 = vpop.permute.xlu2 %1001 }
 0x56a   :  { %v1010_v45 = vsel %vm1009_vm3, %v1008_v42, %v1002_v43 }
 0x56b   :  { %v1012_v46 = vsel %vm1011_vm4, %v1010_v45, %v1006_v44 }
 0x56c   :  { %v1016_v47 = vadd.f32 %v1838_v41, %v1012_v46 }
 0x56e   :  { %v1018_v48 = vmin.f32 %v1016_v47, 0.0  ;;  %vm1017_vm5 = vcmp.gt.f32.partialorder %v1016_v47, 0.0 }
 0x570   :  { %v1019_v49 = vmul.f32 1.442695, %v1018_v48 }
 0x572   :  { %1861 = vpow2.f32 %v1019_v49 }
 0x578   :  { %v1862_v52 = vpop.eup %1861 }
 0x579   :  { %v1796_v54 = vadd.f32 -1.0, %v1862_v52 }
 0x57b   :  { %v1022_v55 = vsel %vm1017_vm5, %v1016_v47, %v1796_v54 }
 0x57c   :  { %v1024_v56 = vmul.f32 %v1023_v53, %v1022_v55 }
 0x57e   :  { %1797 = vmatmul.msk.f32.vlgmr.msrb.gmra.mxu0 %vm1033_vm6, %v1024_v56 }
 0x57f   :  { %1478 = vmatpush.msrb.mxu0 %v1181_v26 }
 0x581   :  { %1479 = vmatpush.msrb.mxu0 %v1180_v27 }
 0x583   :  { %1480 = vmatpush.msrb.mxu0 %v1179_v28 }
 0x585   :  { %1481 = vmatpush.msrb.mxu0 %v1178_v29 }
 0x586   :  { %1201 = vmatmul.f32.vlgmr.msra.gmra.mxu0 %v2200_v50  ;;  %v1841_v50 = vld [vmem:[#allocation15] ss:$0 sm:$0xff] }
 0x5fb   :  { %v1054_v58 = vpop.f32.mrf.mxu0 }
 0x5fc   :  { %1798 = vmatpush.xpose.msk.msrb.mxu1 %vm1009_vm3, %v1054_v58  ;;  %1142 = vmatpush.msra.mxu2 %v1054_v58  ;;  %v1060_v60 = vmul.f32 %v1839_v57, %v1054_v58 }
 0x5fe   :  { %v1061_v61 = vsel %vm1009_vm3, %v1060_v60, 0.0  ;;  %1338 = vmatpush.msrb.mxu2 %v1181_v26 }
 0x5ff   :  { %1799 = vmatmul.msk.f32.vlgmr.msrb.gmra.mxu1 %vm1009_vm3, %v1029_v59  ;;  %1062 = vadd.xlane.f32.xlu0 %v1061_v61 }
 0x600   :  { %1268 = vmatpush.msra.mxu1 %v1181_v26  ;;  %1339 = vmatpush.msrb.mxu2 %v1180_v27 }
 0x602   :  { %1269 = vmatpush.msra.mxu1 %v1180_v27  ;;  %1340 = vmatpush.msrb.mxu2 %v1179_v28 }
 0x603   :  { %v1202_v35 = vpop.f32.mrf.mxu0 }
 0x604   :  { %1270 = vmatpush.msra.mxu1 %v1179_v28  ;;  %1341 = vmatpush.msrb.mxu2 %v1178_v29 }
 0x606   :  { %1271 = vmatpush.msra.mxu1 %v1178_v29 }
 0x608   :  { %1548 = vmatpush.msrb.mxu1 %v1181_v26 }
 0x60a   :  { %1549 = vmatpush.msrb.mxu1 %v1180_v27 }
 0x60c   :  { %1550 = vmatpush.msrb.mxu1 %v1179_v28 }
 0x60e   :  { %1551 = vmatpush.msrb.mxu1 %v1178_v29 }
 0x672   :  { %v1063_v0 = vpop.xlane.xlu0 %1062 }
 0x67c   :  { %v1087_v62 = vpop.f32.mrf.mxu1 }
 0x67d   :  { %v1090_v63 = vperm.slane %v1087_v62, 0 }
 0x67f   :  { %v1091_v1 = vadd.f32 %v1090_v63, %v1063_v0 }
 0x681   :  { %vm1092_vm7 = vcmp.gt.f32.partialorder %v1091_v1, 0.0  ;;  %v1093_v2 = vmul.f32 0.2, %v1091_v1 }
 0x683   :  { %v1094_v3 = vsel %vm1092_vm7, %v1091_v1, %v1093_v2 }
 0x684   :  { %v1095_v4 = vsel %vm661_vm13, %v1094_v3, -1e+09 }
 0x685   :  { %v1096_v5 = vsel %vm626_vm10, %v1095_v4, -inf }
 0x686   :  { %1097 = vmax.xlane.f32.xlu2 %v1096_v5 }
 0x6f9   :  { %v1098_v6 = vpop.xlane.xlu2 %1097 }
 0x6fa   :  { %v1099_v7 = vsub.f32 %v1095_v4, %v1098_v6 }
 0x6fc   :  { %v1100_v8 = vmul.f32 1.442695, %v1099_v7 }
 0x6fe   :  { %1863 = vpow2.f32 %v1100_v8 }
 0x704   :  { %v1864_v9 = vpop.eup %1863 }
 0x705   :  { %v1102_v10 = vsel %vm626_vm10, %v1864_v9, 0.0 }
 0x706   :  { %1103 = vadd.xlane.f32.xlu1 %v1102_v10 }
 0x779   :  { %v1104_v11 = vpop.xlane.xlu1 %1103 }
 0x77a   :  { %1865 = vrcp.f32 %v1104_v11  ;;  %v1116_v15 = vand.u32 2147483648, %v1104_v11  ;;  %v1114_v51 = vand.u32 2147483647, %v1104_v11  ;;  %vm1110_vm13 = vweird.f32 %v1104_v11 }
 0x77c   :  { %v1117_v18 = vor.u32 1.1754944e-38, %v1116_v15  ;;  %vm1115_vm11 = vcmp.eq.f32.partialorder %v1114_v51, 8.507059e+37 }
 0x780   :  { %v1866_v12 = vpop.eup %1865 }
 0x781   :  { %v1106_v13 = vmul.f32 %v1866_v12, %v1104_v11  ;;  %vm1111_vm8 = vweird.f32 %v1866_v12 }
 0x782   :  { %vm1112_vm9 = vmor %vm1110_vm13, %vm1111_vm8 }
 0x783   :  { %v1107_v14 = vsub.f32 1.0, %v1106_v13 }
 0x785   :  { %v1108_v16 = vmul.f32 %v1866_v12, %v1107_v14 }
 0x787   :  { %v1109_v17 = vadd.f32 %v1866_v12, %v1108_v16 }
 0x789   :  { %v1113_v19 = vsel %vm1112_vm9, %v1866_v12, %v1109_v17 }
 0x78a   :  { %v1118_v20 = vsel %vm1115_vm11, %v1117_v18, %v1113_v19 }
 0x78b   :  { %v1119_v22 = vmul.f32 %v1864_v9, %v1118_v20 }
 0x78d   :  { %v1120_v23 = vmul.f32 %v1119_v22, %v1032_v21 }
 0x78f   :  { %1800 = vmatmul.msk.f32.vlgmr.msra.gmra.mxu2 %vm626_vm10, %v1120_v23 }
 0x790   :  { %1618 = vmatpush.msra.mxu2 %v1181_v26 }
 0x792   :  { %1619 = vmatpush.msra.mxu2 %v1180_v27 }
 0x794   :  { %1620 = vmatpush.msra.mxu2 %v1179_v28 }
 0x796   :  { %1621 = vmatpush.msra.mxu2 %v1178_v29 }
 0x812   :  { %v1144_v31 = vpop.f32.mrf.mxu2 }
 0x813   :  { %v1145_v32 = vadd.f32 %v1840_v30, %v1144_v31 }
 0x815   :  { %1801 = vmatmul.msk.f32.vlgmr.msra.gmra.mxu3 %vm1009_vm3, %v1145_v32 }
 0x816   :  { %1688 = vmatpush.msra.mxu3 %v1181_v26 }
 0x818   :  { %1689 = vmatpush.msra.mxu3 %v1180_v27 }
 0x81a   :  { %1690 = vmatpush.msra.mxu3 %v1179_v28 }
 0x81c   :  { %1691 = vmatpush.msra.mxu3 %v1178_v29 }
 0x898   :  { %v1173_v33 = vpop.f32.mrf.mxu3 }
 0x899   :  { %v1174_v34 = vadd.f32 %v1841_v50, %v1173_v33 }
 0x89b   :  { %1176 = vst [vmem:[#allocation2] sm:$0xff] %v1174_v34 }
 0x8a2   :  { %v1177_v36 = vld [vmem:[#allocation2] sm:$0x1]  ;;  %v1249_v63 = vld [vmem:[#allocation2 + $0x1] sm:$0x1]  ;;  %v1319_v24 = vld [vmem:[#allocation2 + $0x2] sm:$0x1] }
 0x8a3   :  { %v1205_v37 = vadd.f32 %v1202_v35, %v1177_v36 }
 0x8a5   :  { %1867 = vtanh.f32 %v1205_v37  ;;  %v1802_v39 = vmul.f32 -1.442695, %v1205_v37 }
 0x8a7   :  { %1869 = vpow2.f32 %v1802_v39 }
 0x8ab   :  { %v1868_v38 = vpop.eup %1867 }
 0x8ac   :  { %1228 = vrot.lane.b32.xlu0 %v1868_v38, %s2201_s12 }
 0x8ad   :  { %v1870_v40 = vpop.eup %1869 }
 0x8ae   :  { %v1209_v41 = vadd.f32 1.0, %v1870_v40 }
 0x8b0   :  { %1871 = vrcp.f32 %v1209_v41  ;;  %v1221_v47 = vand.u32 2147483648, %v1209_v41  ;;  %vm1215_vm12 = vweird.f32 %v1209_v41  ;;  %v1219_v48 = vand.u32 2147483647, %v1209_v41 }
 0x8b2   :  { %v1222_v52 = vor.u32 1.1754944e-38, %v1221_v47  ;;  %vm1220_vm15 = vcmp.eq.f32.partialorder %v1219_v48, 8.507059e+37 }
 0x8b6   :  { %v1872_v42 = vpop.eup %1871 }
 0x8b7   :  { %v1211_v43 = vmul.f32 %v1872_v42, %v1209_v41  ;;  %vm1216_vm10 = vweird.f32 %v1872_v42 }
 0x8b8   :  { %vm1217_vm14 = vmor %vm1215_vm12, %vm1216_vm10 }
 0x8b9   :  { %v1212_v44 = vsub.f32 1.0, %v1211_v43 }
 0x8bb   :  { %v1213_v45 = vmul.f32 %v1872_v42, %v1212_v44 }
 0x8bd   :  { %v1214_v46 = vadd.f32 %v1872_v42, %v1213_v45 }
 0x8bf   :  { %v1218_v49 = vsel %vm1217_vm14, %v1872_v42, %v1214_v46 }
 0x8c0   :  { %v1223_v54 = vsel %vm1220_vm15, %v1222_v52, %v1218_v49  ;;  %v1389_v49 = vld [vmem:[#allocation2 + $0x3] sm:$0x1] }
 0x8c1   :  { %v1226_v56 = vmul.f32 0.0, %v1223_v54 }
 0x91e   :  { %v1229_v53 = vpop.permute.xlu0 %1228 }
 0x91f   :  { %v1231_v55 = vmul.f32 %v1229_v53, %v1223_v54 }
 0x921   :  { %1233 = vrot.lane.b32.xlu2 %v1231_v55, %s2202_s2 }
 0x97b   :  { %v1234_v57 = vpop.permute.xlu2 %1233 }
 0x97c   :  { %v1236_v58 = vadd.f32 %v1234_v57, %v1226_v56 }
 0x97e   :  { %1873 = vtanh.f32 %v1236_v58 }
 0x984   :  { %v1874_v59 = vpop.eup %1873 }
 0x985   :  { %1239 = vrot.lane.b32.xlu1 %v1874_v59, %s2201_s12 }
 0x9f7   :  { %v1240_v60 = vpop.permute.xlu1 %1239 }
 0x9f8   :  { %v1242_v61 = vmul.f32 %v1240_v60, %v1223_v54 }
 0x9fa   :  { %1244 = vrot.lane.b32.xlu0 %v1242_v61, %s2202_s2 }
 0xa6c   :  { %v1245_v62 = vpop.permute.xlu0 %1244 }
 0xa6d   :  { %1248 = vst.msk [vmem:[#allocation3] sm:$0x1] %vm1247_vm0, %v1245_v62  ;;  %1803 = vmatmul.msk.f32.vlgmr.msra.gmra.mxu1 %vm1033_vm6, %v1245_v62 }
 0xaea   :  { %v1273_v0 = vpop.f32.mrf.mxu1 }
 0xaeb   :  { %v1276_v1 = vadd.f32 %v1273_v0, %v1249_v63 }
 0xaed   :  { %1875 = vtanh.f32 %v1276_v1  ;;  %v1804_v3 = vmul.f32 -1.442695, %v1276_v1 }
 0xaef   :  { %1877 = vpow2.f32 %v1804_v3 }
 0xaf3   :  { %v1876_v2 = vpop.eup %1875 }
 0xaf4   :  { %1299 = vrot.lane.b32.xlu0 %v1876_v2, %s2201_s12 }
 0xaf5   :  { %v1878_v4 = vpop.eup %1877 }
 0xaf6   :  { %v1280_v5 = vadd.f32 1.0, %v1878_v4 }
 0xaf8   :  { %1879 = vrcp.f32 %v1280_v5  ;;  %v1292_v11 = vand.u32 2147483648, %v1280_v5  ;;  %vm1286_vm2 = vweird.f32 %v1280_v5  ;;  %v1290_v12 = vand.u32 2147483647, %v1280_v5 }
 0xafa   :  { %v1293_v14 = vor.u32 1.1754944e-38, %v1292_v11  ;;  %vm1291_vm4 = vcmp.eq.f32.partialorder %v1290_v12, 8.507059e+37 }
 0xafe   :  { %v1880_v6 = vpop.eup %1879 }
 0xaff   :  { %v1282_v7 = vmul.f32 %v1880_v6, %v1280_v5  ;;  %vm1287_vm1 = vweird.f32 %v1880_v6 }
 0xb00   :  { %vm1288_vm3 = vmor %vm1286_vm2, %vm1287_vm1 }
 0xb01   :  { %v1283_v8 = vsub.f32 1.0, %v1282_v7 }
 0xb03   :  { %v1284_v9 = vmul.f32 %v1880_v6, %v1283_v8 }
 0xb05   :  { %v1285_v10 = vadd.f32 %v1880_v6, %v1284_v9 }
 0xb07   :  { %v1289_v13 = vsel %vm1288_vm3, %v1880_v6, %v1285_v10 }
 0xb08   :  { %v1294_v16 = vsel %vm1291_vm4, %v1293_v14, %v1289_v13  ;;  %v1459_v13 = vld [vmem:[#allocation2 + $0x4] sm:$0x1] }
 0xb09   :  { %v1297_v17 = vmul.f32 %v1294_v16, %v1236_v58 }
 0xb66   :  { %v1300_v15 = vpop.permute.xlu0 %1299 }
 0xb67   :  { %v1302_v51 = vmul.f32 %v1300_v15, %v1294_v16 }
 0xb69   :  { %1304 = vrot.lane.b32.xlu2 %v1302_v51, %s2202_s2 }
 0xbc3   :  { %v1305_v18 = vpop.permute.xlu2 %1304 }
 0xbc4   :  { %v1307_v19 = vadd.f32 %v1305_v18, %v1297_v17 }
 0xbc6   :  { %1881 = vtanh.f32 %v1307_v19 }
 0xbcc   :  { %v1882_v20 = vpop.eup %1881 }
 0xbcd   :  { %1310 = vrot.lane.b32.xlu1 %v1882_v20, %s2201_s12 }
 0xc3f   :  { %v1311_v21 = vpop.permute.xlu1 %1310 }
 0xc40   :  { %v1313_v22 = vmul.f32 %v1311_v21, %v1294_v16 }
 0xc42   :  { %1315 = vrot.lane.b32.xlu0 %v1313_v22, %s2202_s2 }
 0xcb4   :  { %v1316_v23 = vpop.permute.xlu0 %1315 }
 0xcb5   :  { %1318 = vst.msk [vmem:[#allocation3 + $0x1] sm:$0x1] %vm1247_vm0, %v1316_v23  ;;  %1805 = vmatmul.msk.f32.vlgmr.msrb.gmra.mxu2 %vm1033_vm6, %v1316_v23 }
 0xd38   :  { %v1343_v25 = vpop.f32.mrf.mxu2 }
 0xd39   :  { %v1346_v26 = vadd.f32 %v1343_v25, %v1319_v24 }
 0xd3b   :  { %1883 = vtanh.f32 %v1346_v26  ;;  %v1806_v28 = vmul.f32 -1.442695, %v1346_v26 }
 0xd3d   :  { %1885 = vpow2.f32 %v1806_v28 }
 0xd41   :  { %v1884_v27 = vpop.eup %1883 }
 0xd42   :  { %1369 = vrot.lane.b32.xlu2 %v1884_v27, %s2201_s12 }
 0xd43   :  { %v1886_v29 = vpop.eup %1885 }
 0xd44   :  { %v1350_v30 = vadd.f32 1.0, %v1886_v29 }
 0xd46   :  { %1887 = vrcp.f32 %v1350_v30  ;;  %v1362_v35 = vand.u32 2147483648, %v1350_v30  ;;  %vm1356_vm7 = vweird.f32 %v1350_v30  ;;  %v1360_v36 = vand.u32 2147483647, %v1350_v30 }
 0xd48   :  { %v1363_v38 = vor.u32 1.1754944e-38, %v1362_v35  ;;  %vm1361_vm13 = vcmp.eq.f32.partialorder %v1360_v36, 8.507059e+37 }
 0xd4c   :  { %v1888_v31 = vpop.eup %1887 }
 0xd4d   :  { %v1352_v32 = vmul.f32 %v1888_v31, %v1350_v30  ;;  %vm1357_vm5 = vweird.f32 %v1888_v31 }
 0xd4e   :  { %vm1358_vm8 = vmor %vm1356_vm7, %vm1357_vm5 }
 0xd4f   :  { %v1353_v50 = vsub.f32 1.0, %v1352_v32 }
 0xd51   :  { %v1354_v33 = vmul.f32 %v1888_v31, %v1353_v50 }
 0xd53   :  { %v1355_v34 = vadd.f32 %v1888_v31, %v1354_v33 }
 0xd55   :  { %v1359_v37 = vsel %vm1358_vm8, %v1888_v31, %v1355_v34 }
 0xd56   :  { %v1364_v40 = vsel %vm1361_vm13, %v1363_v38, %v1359_v37  ;;  %v1529_v37 = vld [vmem:[#allocation2 + $0x5] sm:$0x1] }
 0xd57   :  { %v1367_v42 = vmul.f32 %v1364_v40, %v1307_v19 }
 0xd9c   :  { %v1370_v39 = vpop.permute.xlu2 %1369 }
 0xd9d   :  { %v1372_v41 = vmul.f32 %v1370_v39, %v1364_v40 }
 0xd9f   :  { %1374 = vrot.lane.b32.xlu1 %v1372_v41, %s2202_s2 }
 0xe11   :  { %v1375_v43 = vpop.permute.xlu1 %1374 }
 0xe12   :  { %v1377_v44 = vadd.f32 %v1375_v43, %v1367_v42 }
 0xe14   :  { %1889 = vtanh.f32 %v1377_v44 }
 0xe1a   :  { %v1890_v45 = vpop.eup %1889 }
 0xe1b   :  { %1380 = vrot.lane.b32.xlu0 %v1890_v45, %s2201_s12 }
 0xe8d   :  { %v1381_v46 = vpop.permute.xlu0 %1380 }
 0xe8e   :  { %v1383_v47 = vmul.f32 %v1381_v46, %v1364_v40 }
 0xe90   :  { %1385 = vrot.lane.b32.xlu2 %v1383_v47, %s2202_s2 }
 0xeea   :  { %v1386_v48 = vpop.permute.xlu2 %1385 }
 0xeeb   :  { %1388 = vst.msk [vmem:[#allocation3 + $0x2] sm:$0x1] %vm1247_vm0, %v1386_v48  ;;  %1807 = vmatmul.msk.f32.vlgmr.msrb.gmra.mxu3 %vm1033_vm6, %v1386_v48 }
 0xf6e   :  { %v1413_v52 = vpop.f32.mrf.mxu3 }
 0xf6f   :  { %v1416_v53 = vadd.f32 %v1413_v52, %v1389_v49 }
 0xf71   :  { %1891 = vtanh.f32 %v1416_v53  ;;  %v1808_v55 = vmul.f32 -1.442695, %v1416_v53 }
 0xf73   :  { %1893 = vpow2.f32 %v1808_v55 }
 0xf77   :  { %v1892_v54 = vpop.eup %1891 }
 0xf78   :  { %1439 = vrot.lane.b32.xlu1 %v1892_v54, %s2201_s12 }
 0xf79   :  { %v1894_v56 = vpop.eup %1893 }
 0xf7a   :  { %v1420_v57 = vadd.f32 1.0, %v1894_v56 }
 0xf7c   :  { %1895 = vrcp.f32 %v1420_v57  ;;  %v1432_v63 = vand.u32 2147483648, %v1420_v57  ;;  %vm1426_vm11 = vweird.f32 %v1420_v57  ;;  %v1430_v0 = vand.u32 2147483647, %v1420_v57 }
 0xf7e   :  { %v1433_v2 = vor.u32 1.1754944e-38, %v1432_v63  ;;  %vm1431_vm12 = vcmp.eq.f32.partialorder %v1430_v0, 8.507059e+37 }
 0xf82   :  { %v1896_v58 = vpop.eup %1895 }
 0xf83   :  { %v1422_v59 = vmul.f32 %v1896_v58, %v1420_v57  ;;  %vm1427_vm9 = vweird.f32 %v1896_v58 }
 0xf84   :  { %vm1428_vm10 = vmor %vm1426_vm11, %vm1427_vm9 }
 0xf85   :  { %v1423_v60 = vsub.f32 1.0, %v1422_v59 }
 0xf87   :  { %v1424_v61 = vmul.f32 %v1896_v58, %v1423_v60 }
 0xf89   :  { %v1425_v62 = vadd.f32 %v1896_v58, %v1424_v61 }
 0xf8b   :  { %v1429_v1 = vsel %vm1428_vm10, %v1896_v58, %v1425_v62 }
 0xf8c   :  { %v1434_v4 = vsel %vm1431_vm12, %v1433_v2, %v1429_v1  ;;  %v1599_v1 = vld [vmem:[#allocation2 + $0x6] sm:$0x1] }
 0xf8d   :  { %v1437_v6 = vmul.f32 %v1434_v4, %v1377_v44 }
 0xfea   :  { %v1440_v3 = vpop.permute.xlu1 %1439 }
 0xfeb   :  { %v1442_v5 = vmul.f32 %v1440_v3, %v1434_v4 }
 0xfed   :  { %1444 = vrot.lane.b32.xlu0 %v1442_v5, %s2202_s2 }
0x105f   :  { %v1445_v7 = vpop.permute.xlu0 %1444 }
0x1060   :  { %v1447_v8 = vadd.f32 %v1445_v7, %v1437_v6 }
0x1062   :  { %1897 = vtanh.f32 %v1447_v8 }
0x1068   :  { %v1898_v9 = vpop.eup %1897 }
0x1069   :  { %1450 = vrot.lane.b32.xlu2 %v1898_v9, %s2201_s12 }
0x10c3   :  { %v1451_v10 = vpop.permute.xlu2 %1450 }
0x10c4   :  { %v1453_v11 = vmul.f32 %v1451_v10, %v1434_v4 }
0x10c6   :  { %1455 = vrot.lane.b32.xlu1 %v1453_v11, %s2202_s2 }
0x1138   :  { %v1456_v12 = vpop.permute.xlu1 %1455 }
0x1139   :  { %1458 = vst.msk [vmem:[#allocation3 + $0x3] sm:$0x1] %vm1247_vm0, %v1456_v12  ;;  %1809 = vmatmul.msk.f32.vlgmr.msrb.gmra.mxu0 %vm1033_vm6, %v1456_v12 }
0x11b6   :  { %v1483_v14 = vpop.f32.mrf.mxu0 }
0x11b7   :  { %v1486_v15 = vadd.f32 %v1483_v14, %v1459_v13 }
0x11b9   :  { %1899 = vtanh.f32 %v1486_v15  ;;  %v1810_v51 = vmul.f32 -1.442695, %v1486_v15 }
0x11bb   :  { %1901 = vpow2.f32 %v1810_v51 }
0x11bf   :  { %v1900_v16 = vpop.eup %1899 }
0x11c0   :  { %1509 = vrot.lane.b32.xlu0 %v1900_v16, %s2201_s12 }
0x11c1   :  { %v1902_v17 = vpop.eup %1901 }
0x11c2   :  { %v1490_v18 = vadd.f32 1.0, %v1902_v17 }
0x11c4   :  { %1903 = vrcp.f32 %v1490_v18  ;;  %v1502_v24 = vand.u32 2147483648, %v1490_v18  ;;  %vm1496_vm15 = vweird.f32 %v1490_v18  ;;  %v1500_v25 = vand.u32 2147483647, %v1490_v18 }
0x11c6   :  { %v1503_v27 = vor.u32 1.1754944e-38, %v1502_v24  ;;  %vm1501_vm2 = vcmp.eq.f32.partialorder %v1500_v25, 8.507059e+37 }
0x11ca   :  { %v1904_v19 = vpop.eup %1903 }
0x11cb   :  { %v1492_v20 = vmul.f32 %v1904_v19, %v1490_v18  ;;  %vm1497_vm14 = vweird.f32 %v1904_v19 }
0x11cc   :  { %vm1498_vm1 = vmor %vm1496_vm15, %vm1497_vm14 }
0x11cd   :  { %v1493_v21 = vsub.f32 1.0, %v1492_v20 }
0x11cf   :  { %v1494_v22 = vmul.f32 %v1904_v19, %v1493_v21 }
0x11d1   :  { %v1495_v23 = vadd.f32 %v1904_v19, %v1494_v22 }
0x11d3   :  { %v1499_v26 = vsel %vm1498_vm1, %v1904_v19, %v1495_v23  ;;  %vm1771_vm1 = vcmask 15360  }
0x11d4   :  { %v1504_v29 = vsel %vm1501_vm2, %v1503_v27, %v1499_v26  ;;  %v1669_v26 = vld [vmem:[#allocation2 + $0x7] sm:$0x1] }
0x11d5   :  { %v1507_v31 = vmul.f32 %v1504_v29, %v1447_v8 }
0x1232   :  { %v1510_v28 = vpop.permute.xlu0 %1509 }
0x1233   :  { %v1512_v30 = vmul.f32 %v1510_v28, %v1504_v29 }
0x1235   :  { %1514 = vrot.lane.b32.xlu2 %v1512_v30, %s2202_s2 }
0x128f   :  { %v1515_v32 = vpop.permute.xlu2 %1514 }
0x1290   :  { %v1517_v50 = vadd.f32 %v1515_v32, %v1507_v31 }
0x1292   :  { %1905 = vtanh.f32 %v1517_v50 }
0x1298   :  { %v1906_v33 = vpop.eup %1905 }
0x1299   :  { %1520 = vrot.lane.b32.xlu1 %v1906_v33, %s2201_s12 }
0x130b   :  { %v1521_v34 = vpop.permute.xlu1 %1520 }
0x130c   :  { %v1523_v35 = vmul.f32 %v1521_v34, %v1504_v29 }
0x130e   :  { %1525 = vrot.lane.b32.xlu0 %v1523_v35, %s2202_s2 }
0x1380   :  { %v1526_v36 = vpop.permute.xlu0 %1525 }
0x1381   :  { %1528 = vst.msk [vmem:[#allocation3 + $0x4] sm:$0x1] %vm1247_vm0, %v1526_v36  ;;  %1811 = vmatmul.msk.f32.vlgmr.msrb.gmra.mxu1 %vm1033_vm6, %v1526_v36 }
0x13fe   :  { %v1553_v38 = vpop.f32.mrf.mxu1 }
0x13ff   :  { %v1556_v39 = vadd.f32 %v1553_v38, %v1529_v37 }
0x1401   :  { %1907 = vtanh.f32 %v1556_v39  ;;  %v1812_v41 = vmul.f32 -1.442695, %v1556_v39 }
0x1403   :  { %1909 = vpow2.f32 %v1812_v41 }
0x1407   :  { %v1908_v40 = vpop.eup %1907 }
0x1408   :  { %1579 = vrot.lane.b32.xlu2 %v1908_v40, %s2201_s12 }
0x1409   :  { %v1910_v42 = vpop.eup %1909 }
0x140a   :  { %v1560_v43 = vadd.f32 1.0, %v1910_v42 }
0x140c   :  { %1911 = vrcp.f32 %v1560_v43  ;;  %v1572_v49 = vand.u32 2147483648, %v1560_v43  ;;  %vm1566_vm4 = vweird.f32 %v1560_v43  ;;  %v1570_v52 = vand.u32 2147483647, %v1560_v43 }
0x140e   :  { %v1573_v54 = vor.u32 1.1754944e-38, %v1572_v49  ;;  %vm1571_vm7 = vcmp.eq.f32.partialorder %v1570_v52, 8.507059e+37  ;;  %v1743_v52 = vld [vmem:[%s2739_s14 + $0x18] sm:$0xff] }
0x140f   :  { %1763 = vmatpush.msra.mxu0 %v1743_v52 }
0x1412   :  { %v1912_v44 = vpop.eup %1911 }
0x1413   :  { %v1562_v45 = vmul.f32 %v1912_v44, %v1560_v43  ;;  %vm1567_vm3 = vweird.f32 %v1912_v44 }
0x1414   :  { %vm1568_vm5 = vmor %vm1566_vm4, %vm1567_vm3 }
0x1415   :  { %v1563_v46 = vsub.f32 1.0, %v1562_v45 }
0x1417   :  { %v1564_v47 = vmul.f32 %v1912_v44, %v1563_v46 }
0x1419   :  { %v1565_v48 = vadd.f32 %v1912_v44, %v1564_v47 }
0x141b   :  { %v1569_v53 = vsel %vm1568_vm5, %v1912_v44, %v1565_v48 }
0x141c   :  { %v1574_v56 = vsel %vm1571_vm7, %v1573_v54, %v1569_v53  ;;  %v1742_v53 = vld [vmem:[%s2739_s14 + $0x10] sm:$0xff]  ;;  %v1741_v54 = vld [vmem:[%s2739_s14 + $0x8] sm:$0xff] }
0x141d   :  { %v1577_v58 = vmul.f32 %v1574_v56, %v1517_v50  ;;  %1764 = vmatpush.msra.mxu0 %v1742_v53 }
0x141f   :  { %1765 = vmatpush.msra.mxu0 %v1741_v54 }
0x1462   :  { %v1580_v55 = vpop.permute.xlu2 %1579 }
0x1463   :  { %v1582_v57 = vmul.f32 %v1580_v55, %v1574_v56  ;;  %v1740_v55 = vld [vmem:[%s2739_s14] sm:$0xff] }
0x1464   :  { %1766 = vmatpush.msra.mxu0 %v1740_v55 }
0x1465   :  { %1584 = vrot.lane.b32.xlu1 %v1582_v57, %s2202_s2 }
0x14d7   :  { %v1585_v59 = vpop.permute.xlu1 %1584 }
0x14d8   :  { %v1587_v60 = vadd.f32 %v1585_v59, %v1577_v58  ;;  %v1842_v58 = vld [vmem:[%s2740_s15] ss:$0 sm:$0xff] }
0x14da   :  { %1913 = vtanh.f32 %v1587_v60 }
0x14e0   :  { %v1914_v61 = vpop.eup %1913 }
0x14e1   :  { %1590 = vrot.lane.b32.xlu0 %v1914_v61, %s2201_s12 }
0x1553   :  { %v1591_v62 = vpop.permute.xlu0 %1590 }
0x1554   :  { %v1593_v63 = vmul.f32 %v1591_v62, %v1574_v56 }
0x1556   :  { %1595 = vrot.lane.b32.xlu2 %v1593_v63, %s2202_s2 }
0x15b0   :  { %v1596_v0 = vpop.permute.xlu2 %1595 }
0x15b1   :  { %1598 = vst.msk [vmem:[#allocation3 + $0x5] sm:$0x1] %vm1247_vm0, %v1596_v0  ;;  %1813 = vmatmul.msk.f32.vlgmr.msra.gmra.mxu2 %vm1033_vm6, %v1596_v0 }
0x1634   :  { %v1623_v2 = vpop.f32.mrf.mxu2 }
0x1635   :  { %v1626_v3 = vadd.f32 %v1623_v2, %v1599_v1 }
0x1637   :  { %1915 = vtanh.f32 %v1626_v3  ;;  %v1814_v5 = vmul.f32 -1.442695, %v1626_v3 }
0x1639   :  { %1917 = vpow2.f32 %v1814_v5 }
0x163d   :  { %v1916_v4 = vpop.eup %1915 }
0x163e   :  { %1649 = vrot.lane.b32.xlu1 %v1916_v4, %s2201_s12 }
0x163f   :  { %v1918_v6 = vpop.eup %1917 }
0x1640   :  { %v1630_v7 = vadd.f32 1.0, %v1918_v6 }
0x1642   :  { %1919 = vrcp.f32 %v1630_v7  ;;  %v1642_v13 = vand.u32 2147483648, %v1630_v7  ;;  %vm1636_vm13 = vweird.f32 %v1630_v7  ;;  %v1640_v14 = vand.u32 2147483647, %v1630_v7 }
0x1644   :  { %v1643_v16 = vor.u32 1.1754944e-38, %v1642_v13  ;;  %vm1641_vm11 = vcmp.eq.f32.partialorder %v1640_v14, 8.507059e+37 }
0x1648   :  { %v1920_v8 = vpop.eup %1919 }
0x1649   :  { %v1632_v9 = vmul.f32 %v1920_v8, %v1630_v7  ;;  %vm1637_vm8 = vweird.f32 %v1920_v8 }
0x164a   :  { %vm1638_vm9 = vmor %vm1636_vm13, %vm1637_vm8 }
0x164b   :  { %v1633_v10 = vsub.f32 1.0, %v1632_v9 }
0x164d   :  { %v1634_v11 = vmul.f32 %v1920_v8, %v1633_v10 }
0x164f   :  { %v1635_v12 = vadd.f32 %v1920_v8, %v1634_v11 }
0x1651   :  { %v1639_v15 = vsel %vm1638_vm9, %v1920_v8, %v1635_v12 }
0x1652   :  { %v1644_v17 = vsel %vm1641_vm11, %v1643_v16, %v1639_v15 }
0x1653   :  { %v1647_v19 = vmul.f32 %v1644_v17, %v1587_v60 }
0x16b0   :  { %v1650_v51 = vpop.permute.xlu1 %1649 }
0x16b1   :  { %v1652_v18 = vmul.f32 %v1650_v51, %v1644_v17 }
0x16b3   :  { %1654 = vrot.lane.b32.xlu0 %v1652_v18, %s2202_s2 }
0x1725   :  { %v1655_v20 = vpop.permute.xlu0 %1654 }
0x1726   :  { %v1657_v21 = vadd.f32 %v1655_v20, %v1647_v19 }
0x1728   :  { %1921 = vtanh.f32 %v1657_v21 }
0x172e   :  { %v1922_v22 = vpop.eup %1921 }
0x172f   :  { %1660 = vrot.lane.b32.xlu2 %v1922_v22, %s2201_s12 }
0x1789   :  { %v1661_v23 = vpop.permute.xlu2 %1660 }
0x178a   :  { %v1663_v24 = vmul.f32 %v1661_v23, %v1644_v17 }
0x178c   :  { %1665 = vrot.lane.b32.xlu1 %v1663_v24, %s2202_s2 }
0x17fe   :  { %v1666_v25 = vpop.permute.xlu1 %1665 }
0x17ff   :  { %1668 = vst.msk [vmem:[#allocation3 + $0x6] sm:$0x1] %vm1247_vm0, %v1666_v25  ;;  %1815 = vmatmul.msk.f32.vlgmr.msra.gmra.mxu3 %vm1033_vm6, %v1666_v25 }
0x1882   :  { %v1693_v27 = vpop.f32.mrf.mxu3 }
0x1883   :  { %v1696_v28 = vadd.f32 %v1693_v27, %v1669_v26 }
0x1885   :  { %1923 = vtanh.f32 %v1696_v28  ;;  %v1816_v30 = vmul.f32 -1.442695, %v1696_v28 }
0x1887   :  { %1925 = vpow2.f32 %v1816_v30 }
0x188b   :  { %v1924_v29 = vpop.eup %1923 }
0x188c   :  { %1719 = vrot.lane.b32.xlu0 %v1924_v29, %s2201_s12 }
0x188d   :  { %v1926_v31 = vpop.eup %1925 }
0x188e   :  { %v1700_v32 = vadd.f32 1.0, %v1926_v31 }
0x1890   :  { %1927 = vrcp.f32 %v1700_v32  ;;  %v1712_v37 = vand.u32 2147483648, %v1700_v32  ;;  %vm1706_vm12 = vweird.f32 %v1700_v32  ;;  %v1710_v38 = vand.u32 2147483647, %v1700_v32 }
0x1892   :  { %v1713_v40 = vor.u32 1.1754944e-38, %v1712_v37  ;;  %vm1711_vm15 = vcmp.eq.f32.partialorder %v1710_v38, 8.507059e+37 }
0x1896   :  { %v1928_v50 = vpop.eup %1927 }
0x1897   :  { %v1702_v33 = vmul.f32 %v1928_v50, %v1700_v32  ;;  %vm1707_vm10 = vweird.f32 %v1928_v50 }
0x1898   :  { %vm1708_vm14 = vmor %vm1706_vm12, %vm1707_vm10 }
0x1899   :  { %v1703_v34 = vsub.f32 1.0, %v1702_v33 }
0x189b   :  { %v1704_v35 = vmul.f32 %v1928_v50, %v1703_v34 }
0x189d   :  { %v1705_v36 = vadd.f32 %v1928_v50, %v1704_v35 }
0x189f   :  { %v1709_v39 = vsel %vm1708_vm14, %v1928_v50, %v1705_v36 }
0x18a0   :  { %v1714_v42 = vsel %vm1711_vm15, %v1713_v40, %v1709_v39 }
0x18a1   :  { %v1717_v44 = vmul.f32 %v1714_v42, %v1657_v21 }
0x18fe   :  { %v1720_v41 = vpop.permute.xlu0 %1719 }
0x18ff   :  { %v1722_v43 = vmul.f32 %v1720_v41, %v1714_v42 }
0x1901   :  { %1724 = vrot.lane.b32.xlu2 %v1722_v43, %s2202_s2 }
0x195b   :  { %v1725_v45 = vpop.permute.xlu2 %1724 }
0x195c   :  { %v1727_v46 = vadd.f32 %v1725_v45, %v1717_v44 }
0x195e   :  { %1929 = vtanh.f32 %v1727_v46 }
0x1964   :  { %v1930_v47 = vpop.eup %1929 }
0x1965   :  { %1730 = vrot.lane.b32.xlu1 %v1930_v47, %s2201_s12 }
0x19d7   :  { %v1731_v48 = vpop.permute.xlu1 %1730 }
0x19d8   :  { %v1733_v49 = vmul.f32 %v1731_v48, %v1714_v42 }
0x19da   :  { %1735 = vrot.lane.b32.xlu0 %v1733_v49, %s2202_s2 }
0x1a4c   :  { %v1736_v56 = vpop.permute.xlu0 %1735 }
0x1a4d   :  { %1738 = vst.msk [vmem:[#allocation3 + $0x7] sm:$0x1] %vm1247_vm0, %v1736_v56 }
0x1a54   :  { %v1739_v57 = vld [vmem:[#allocation3] sm:$0xff] }
0x1a55   :  { %1817 = vmatmul.msk.f32.vlgmr.msra.gmra.mxu0 %vm1033_vm6, %v1739_v57 }
0x1ad2   :  { %v1768_v59 = vpop.f32.mrf.mxu0 }
0x1ad3   :  { %v1769_v60 = vadd.f32 %v1842_v58, %v1768_v59 }
0x1ad5   :  { %1772 = vst.msk [vmem:[%s2745_s20] sm:$0xff] %vm1771_vm1, %v1769_v60 }
0x1ad6   :  { %1777 = vsyncpa [#allocation5], 1 }
0x1ad7   :  { %1778 = vsyncpa [#allocation7], 1 }
0x1ad8   :  { %1779 = vsyncpa [#allocation10], 1 }
0x1ad9   :  { %1780 = vsyncpa [#allocation13], 1 }
0x1ada   :  { %1781 = vsyncpa [#allocation16], 1 }
0x1adb   :  { %1782 = vsyncpa [#allocation19], 1 }

</bundles_post_ra>
